<compile_context>
chip_gen: v7x
topology: tpu7x:2x2x1
jax: 0.10.0
libtpu: 0.0.40
codegen_flags: <defaults>
</compile_context>

<pallas_src>
import jax
import jax.numpy as jnp
from jax.experimental import pallas as pl
from jax.experimental.pallas import tpu as pltpu

NUM_FEATURES = 1536  # efficientnet-b3 _fc.in_features


def _head_kernel(feat_ref, w_ref, b_ref, out_ref):
    # feat_ref: (TB, S, C) backbone features (bf16 or f32) in VMEM
    # w_ref:    (1, C)     f32 fc weight row, pre-scaled by 1/S (folds the avg pool)
    # b_ref:    (1,)       f32 fc bias in SMEM
    # out_ref:  (TB, 1)    f32 in VMEM
    feats = feat_ref[...].astype(jnp.float32)        # widen in-register (v5e VPU has no bf16 ALU)
    pooled = jnp.sum(feats, axis=1)                  # (TB, C) spatial sum; 1/S folded into weights
    logits = jnp.sum(pooled * w_ref[...], axis=-1, keepdims=True) + b_ref[0]   # (TB, 1)
    out_ref[...] = jax.nn.sigmoid(logits).astype(out_ref.dtype)


def _vmem_budget_bytes():
    """~75% of this generation's per-core VMEM (fallback: conservative 64 MiB / v7x)."""
    try:
        info = pltpu.get_tpu_info()
        cap = int(getattr(info, "vmem_capacity_bytes", 64 << 20))
    except Exception:
        cap = 64 << 20
    return (cap * 3) // 4


def _select_batch_tile(B, S, C, itemsize, vmem_budget):
    # Per batch row: 2 pipeline buffers of the native-dtype tile plus the
    # f32-widened intermediate produced inside the kernel (budgeted so Mosaic
    # may materialize the cast without spilling).
    per_row = S * C * (2 * itemsize + 4)
    headroom = 2 << 20
    fit = max(1, (vmem_budget - headroom) // per_row)
    tb = int(min(fit, 128))
    tb = max(8, (tb // 8) * 8)
    # Keep >= 2 grid steps when the batch allows it so both v7x TensorCores get
    # work under dimension_semantics=("parallel",); ~free on single-TC v5e/v6e.
    if B >= 16:
        tb = min(tb, max(8, (((B + 1) // 2) // 8) * 8))
    # Never exceed the (8-rounded) batch.
    tb = min(tb, max(8, pl.cdiv(B, 8) * 8))
    return tb


def binary_classifier_head(feats_nhwc, w, b):
    """feats_nhwc: [B, H, W, C] backbone features; w: [C, 1]; b: [1] -> out [B, 1] f32."""
    B, H, W, C = feats_nhwc.shape
    assert C == w.shape[0]
    S = H * W

    # Stream the backbone dtype (bf16 preferred) — no wrapper-side HBM upcast pass.
    feats = feats_nhwc.reshape(B, S, C)

    vmem_budget = _vmem_budget_bytes()
    tb = _select_batch_tile(B, S, C, feats.dtype.itemsize, vmem_budget)

    # No wrapper-side pad: boundary-block rows are garbage in VMEM but only
    # feed their own (masked) output rows, so the result stays exact.
    grid = (pl.cdiv(B, tb),)

    # Fold the global-average-pool 1/S into the fc weight; lane-dense (1, C) row.
    w_row = (w.astype(jnp.float32).reshape(1, C)) / jnp.float32(S)
    b_vec = b.astype(jnp.float32).reshape(1)

    # VMEM: 2 pipeline buffers of the native-dtype tile + the f32 widen + misc.
    tile_bytes = tb * S * C * feats.dtype.itemsize
    vmem_bytes = 2 * tile_bytes + tb * S * C * 4 + (2 << 20)
    vmem_bytes = int(min(max(vmem_bytes, 4 << 20), vmem_budget))

    cost = pl.CostEstimate(
        flops=int(2 * B * S * C),
        transcendentals=int(B),
        bytes_accessed=int(B * S * C * feats.dtype.itemsize + C * 4 + B * 4),
    )

    out = pl.pallas_call(
        _head_kernel,
        out_shape=jax.ShapeDtypeStruct((B, 1), jnp.float32),
        grid=grid,
        in_specs=[
            pl.BlockSpec((tb, S, C), lambda i: (i, 0, 0)),
            pl.BlockSpec((1, C), lambda i: (0, 0)),
            pl.BlockSpec(memory_space=pltpu.MemorySpace.SMEM),
        ],
        out_specs=pl.BlockSpec((tb, 1), lambda i: (i, 0)),
        compiler_params=pltpu.CompilerParams(
            dimension_semantics=("parallel",),
            vmem_limit_bytes=vmem_bytes,
        ),
        cost_estimate=cost,
    )(feats, w_row, b_vec)
    return out


if __name__ == "__main__":
    key = jax.random.PRNGKey(0)
    k_feat, k_w, k_b = jax.random.split(key, 3)

    # Small, deterministic backbone feature map standing in for the
    # EfficientNet-B3 output (real B3 @ 300x300 would give [B, 10, 10, 1536]).
    B, Hf, Wf, C = 2, 4, 4, NUM_FEATURES
    feats = jax.random.normal(k_feat, (B, Hf, Wf, C), dtype=jnp.float32).astype(jnp.bfloat16)

    # PyTorch nn.Linear(1536, 1) default init: U(-1/sqrt(C), 1/sqrt(C))
    bound = 1.0 / float(jnp.sqrt(jnp.float32(C)))
    w = jax.random.uniform(k_w, (C, 1), minval=-bound, maxval=bound, dtype=jnp.float32)
    b = jax.random.uniform(k_b, (1,), minval=-bound, maxval=bound, dtype=jnp.float32)

    out = jax.block_until_ready(binary_classifier_head(feats, w, b))

    # Pure-JAX reference (same bf16 inputs widened to f32, f32 accumulation).
    feats_f32 = feats.astype(jnp.float32).reshape(B, -1, C)
    ref = jax.nn.sigmoid(feats_f32.mean(axis=1) @ w + b)

    assert out.shape == (B, 1)
    assert out.dtype == jnp.float32
    assert jnp.allclose(out, ref, atol=2e-5, rtol=1e-5)
    print("KERNEL_OK")
</pallas_src>

<mosaic_0001>
module attributes {stable_mosaic.version = 11 : i64} {
  func.func @_head_kernel(%arg0: i32, %arg1: memref<8x16x1536xbf16, #tpu.memory_space<vmem>>, %arg2: memref<1x1536xf32, #tpu.memory_space<vmem>>, %arg3: memref<1xf32, #tpu.memory_space<smem>>, %arg4: memref<8x1xf32, #tpu.memory_space<vmem>>) attributes {dimension_semantics = [#tpu.dimension_semantics<parallel>], iteration_bounds = array<i64: 1>, scalar_prefetch = 0 : i64, scratch_operands = 0 : i64, tpu.core_type = #tpu.core_type<tc>, window_params = [{transform_indices = @transform_0, window_bounds = array<i64: 8, 16, 1536>}, {pipeline_mode = #tpu.pipeline_mode<synchronous>, transform_indices = @transform_1, window_bounds = array<i64: 1, 1536>}, {transform_indices = @transform_2, window_bounds = array<i64: 1>}, {transform_indices = @transform_3, window_bounds = array<i64: 8, 1>}]} {
    %c0 = arith.constant 0 : index
    %c0_0 = arith.constant 0 : index
    %c0_1 = arith.constant 0 : index
    %0 = vector.load %arg1[%c0, %c0_0, %c0_1] : memref<8x16x1536xbf16, #tpu.memory_space<vmem>>, vector<8x16x1536xbf16>
    %1 = arith.extf %0 : vector<8x16x1536xbf16> to vector<8x16x1536xf32>
    %cst = arith.constant dense<0.000000e+00> : vector<8x1536xf32>
    %2 = vector.multi_reduction <add>, %1, %cst [1] : vector<8x16x1536xf32> to vector<8x1536xf32>
    %c0_2 = arith.constant 0 : index
    %c0_3 = arith.constant 0 : index
    %3 = vector.load %arg2[%c0_2, %c0_3] : memref<1x1536xf32, #tpu.memory_space<vmem>>, vector<1x1536xf32>
    %4 = vector.broadcast %3 : vector<1x1536xf32> to vector<8x1536xf32>
    %5 = arith.mulf %2, %4 : vector<8x1536xf32>
    %cst_4 = arith.constant dense<0.000000e+00> : vector<8xf32>
    %6 = vector.multi_reduction <add>, %5, %cst_4 [1] : vector<8x1536xf32> to vector<8xf32>
    %7 = vector.shape_cast %6 : vector<8xf32> to vector<8x1xf32>
    %c0_5 = arith.constant 0 : index
    %8 = memref.load %arg3[%c0_5] : memref<1xf32, #tpu.memory_space<smem>>
    %9 = vector.broadcast %8 : f32 to vector<8x1xf32>
    %10 = arith.addf %7, %9 : vector<8x1xf32>
    %11 = arith.negf %10 : vector<8x1xf32>
    %12 = math.exp %11 : vector<8x1xf32>
    %cst_6 = arith.constant 1.000000e+00 : f32
    %13 = vector.broadcast %cst_6 : f32 to vector<8x1xf32>
    %14 = arith.addf %13, %12 : vector<8x1xf32>
    %15 = arith.divf %13, %14 : vector<8x1xf32>
    %c0_7 = arith.constant 0 : index
    %c0_8 = arith.constant 0 : index
    %16 = vector.load %arg4[%c0_7, %c0_8] : memref<8x1xf32, #tpu.memory_space<vmem>>, vector<8x1xf32>
    tpu.vector_store %arg4[%c0_7, %c0_8], %15 {strides = array<i32>} : memref<8x1xf32, #tpu.memory_space<vmem>>, vector<8x1xf32>,
    return
  }
  func.func @transform_0(%arg0: i32) -> (i32, i32, i32) {
    %c0_i32 = arith.constant 0 : i32
    %c0_i32_0 = arith.constant 0 : i32
    %c0_i32_1 = arith.constant 0 : i32
    return %arg0, %c0_i32, %c0_i32_0 : i32, i32, i32
  }
  func.func @transform_1(%arg0: i32) -> (i32, i32) {
    %c0_i32 = arith.constant 0 : i32
    %c0_i32_0 = arith.constant 0 : i32
    %c0_i32_1 = arith.constant 0 : i32
    return %c0_i32, %c0_i32_0 : i32, i32
  }
  func.func @transform_2(%arg0: i32) -> i32 {
    %c0_i32 = arith.constant 0 : i32
    %c0_i32_0 = arith.constant 0 : i32
    return %c0_i32 : i32
  }
  func.func @transform_3(%arg0: i32) -> (i32, i32) {
    %c0_i32 = arith.constant 0 : i32
    %c0_i32_0 = arith.constant 0 : i32
    return %arg0, %c0_i32 : i32, i32
  }
}

</mosaic_0001>

<bundles_post_ra>
// kernel: tpu_custom_call.1
= control target key start
LH: loop header
LB: loop body
LE: loop exit
PB: predicated region body
PF: predicated region fallthrough
CT: control target
= control target key end

     0   :  { %9 = vsyncpa [#allocation4], 0  ;;  %s3165_s0 = inlined_call_operand.hbm [shape: bf16[2,16,1536], index: 0, kind: input, shape index: {}]   ;;  %s3166_s1 = inlined_call_operand.hbm [shape: f32[1,1536], index: 1, kind: input, shape index: {}]   ;;  %s3167_s2 = inlined_call_operand.<no memory space> [shape: f32[1], index: 2, kind: input, shape index: {}]   ;;  %s3168_s3 = inlined_call_operand.vmem [shape: f32[2,1], index: 3, kind: output, shape index: {}]  }
   0x1   :  { %10 = vsyncpa [#allocation6], 0 }
   0x2   :  { %15 = vsyncadd [#allocation4], 9216  ;;  %s1566_s12 = smov [#allocation3]   ;;  %s1518_s16 = scalar_lea.hbm %s3165_s0, 3072 }
   0x3   :  { %s16_s13 = sshll.u32 %s1566_s12, 4  ;;  %p1519_p0 = scmp.ne.s32.totalorder %s3165_s0, %s1518_s16  ;;  %s17_s13 = int_to_ptr.vmem [resolvable:$true] %s16_s13 }
   0x4   :  { %p1522_p1 = scmp.lt.u32.totalorder %s1518_s16, %s3165_s0 }
   0x6   :  { %p1524_p2 = pnand %p1522_p1, %p1519_p0 }
   0x8   :  { %1527 = shalt.err (!%p1524_p2)
}
   0x9   :  { %s1528_s21 = scalar_lea.vmem %s17_s13, 3072  ;;  %s1532_s22 = scalar_lea.vmem %s17_s13, 12288 }
   0xa   :  { %p1529_p3 = scmp.ne.s32.totalorder %s17_s13, %s1528_s21  ;;  %p1533_p4 = scmp.lt.s32.totalorder %s17_s13, %s17_s13 }
   0xb   :  { %p1534_p5 = scmp.lt.s32.totalorder %s1532_s22, %s1528_s21 }
   0xd   :  { %p1535_p6 = por %p1534_p5, %p1533_p4 }
   0xf   :  { %p1536_p7 = pnand %p1535_p6, %p1529_p3 }
  0x11   :  { %1539 = shalt.err (!%p1536_p7)
}
  0x12   :  { %s1567_s23 = smov 768   ;;  %s1568_s24 = smov 48  }
  0x13   :  { %22 = dma.hbm_to_vmem [thread:$0]  %s3165_s0, 3072, %s17_s13, [#allocation4], %s1567_s23, %s1567_s23, %s1568_s24  }
  0x14   :  { %s1569_s27 = smov [#allocation5]   ;;  %s1540_s4 = scalar_lea.hbm %s3166_s1, 192 }
  0x15   :  { %s29_s28 = sshll.u32 %s1569_s27, 4  ;;  %p1541_p8 = scmp.ne.s32.totalorder %s3166_s1, %s1540_s4  ;;  %s30_s28 = int_to_ptr.vmem [resolvable:$true] %s29_s28 }
  0x16   :  { %p1544_p9 = scmp.lt.u32.totalorder %s1540_s4, %s3166_s1 }
  0x18   :  { %p1546_p10 = pnand %p1544_p9, %p1541_p8 }
  0x1a   :  { %1549 = shalt.err (!%p1546_p10)
}
  0x1b   :  { %s1550_s9 = scalar_lea.vmem %s30_s28, 192  ;;  %p1555_p12 = scmp.lt.s32.totalorder %s30_s28, %s30_s28 }
  0x1c   :  { %p1551_p11 = scmp.ne.s32.totalorder %s30_s28, %s1550_s9  ;;  %p1556_p13 = scmp.lt.s32.totalorder %s1550_s9, %s1550_s9 }
  0x1e   :  { %p1557_p0 = por %p1556_p13, %p1555_p12 }
  0x20   :  { %p1558_p1 = pnand %p1557_p0, %p1551_p11 }
  0x22   :  { %1561 = shalt.err (!%p1558_p1)
}
  0x23   :  { %32 = dma.hbm_to_vmem [thread:$0]  %s3166_s1, 192, %s30_s28, [#allocation6]  }
  0x24   :  { %1562 = dma.done.wait [#allocation4], 12288  }
  0x25   :  { %1563 = vsyncadd [#allocation4], 4294955008 }
  0x26   :  { %1564 = dma.done.wait [#allocation6], 192  }
  0x27   :  { %1565 = vsyncadd [#allocation6], 4294967104  ;;  %v1614_v0 = vld [vmem:[#allocation3] sm:$0xff]  ;;  %v1616_v1 = vld [vmem:[#allocation3 + $0x8] sm:$0xff]  ;;  %vm1258_vm0 = vcmask 1041409   ;;  %vm1261_vm1 = vcmask 1042434  }
  0x28   :  { %v1618_v2 = vld [vmem:[#allocation3 + $0x10] sm:$0xff]  ;;  %v1620_v3 = vld [vmem:[#allocation3 + $0x18] sm:$0xff]  ;;  %v1622_v4 = vld [vmem:[#allocation3 + $0x20] sm:$0xff]  ;;  %vm1264_vm2 = vcmask 1043459   ;;  %vm1267_vm3 = vcmask 1044484   ;;  %vm1270_vm4 = vcmask 1045509  }
  0x29   :  { %v1624_v5 = vld [vmem:[#allocation3 + $0x28] sm:$0xff]  ;;  %v1626_v6 = vld [vmem:[#allocation3 + $0x30] sm:$0xff]  ;;  %v1628_v7 = vld [vmem:[#allocation3 + $0x38] sm:$0xff]  ;;  %vm1273_vm5 = vcmask 1046534   ;;  %vm1276_vm6 = vcmask 1047559   ;;  %vm1466_vm7 = vcmask 7168  }
  0x2a   :  { %v1634_v12 = vld [vmem:[#allocation3 + $0x40] sm:$0xff]  ;;  %v1636_v13 = vld [vmem:[#allocation3 + $0x48] sm:$0xff]  ;;  %v1642_v18 = vld [vmem:[#allocation3 + $0x50] sm:$0xff] }
  0x2b   :  { %v1644_v19 = vld [vmem:[#allocation3 + $0x58] sm:$0xff]  ;;  %v1650_v24 = vld [vmem:[#allocation3 + $0x60] sm:$0xff]  ;;  %v1652_v25 = vld [vmem:[#allocation3 + $0x68] sm:$0xff] }
  0x2c   :  { %v1658_v30 = vld [vmem:[#allocation3 + $0x70] sm:$0xff]  ;;  %v1660_v31 = vld [vmem:[#allocation3 + $0x78] sm:$0xff]  ;;  %v1666_v36 = vld [vmem:[#allocation3 + $0x80] sm:$0xff] }
  0x2d   :  { %v1668_v37 = vld [vmem:[#allocation3 + $0x88] sm:$0xff]  ;;  %v1674_v42 = vld [vmem:[#allocation3 + $0x90] sm:$0xff]  ;;  %v1676_v43 = vld [vmem:[#allocation3 + $0x98] sm:$0xff] }
  0x2e   :  { %v1682_v48 = vld [vmem:[#allocation3 + $0xa0] sm:$0xff]  ;;  %v1684_v49 = vld [vmem:[#allocation3 + $0xa8] sm:$0xff]  ;;  %v1690_v54 = vld [vmem:[#allocation3 + $0xb0] sm:$0xff] }
  0x2f   :  { %v1692_v55 = vld [vmem:[#allocation3 + $0xb8] sm:$0xff]  ;;  %v1698_v60 = vld [vmem:[#allocation3 + $0xc0] sm:$0xff]  ;;  %v1700_v61 = vld [vmem:[#allocation3 + $0xc8] sm:$0xff] }
  0x30   :  { %v1706_v51 = vld [vmem:[#allocation3 + $0xd0] sm:$0xff]  ;;  %v1708_v56 = vld [vmem:[#allocation3 + $0xd8] sm:$0xff]  ;;  %v1714_v47 = vld [vmem:[#allocation3 + $0xe0] sm:$0xff] }
  0x31   :  { %3305 = vst [vmem:[#allocation10_spill] sm:$0xff] %v1706_v51  ;;  %3306 = vst [vmem:[#allocation11_spill] sm:$0xff] %v1708_v56  ;;  %v1716_v46 = vld [vmem:[#allocation3 + $0xe8] sm:$0xff]  ;;  %v1722_v62 = vld [vmem:[#allocation3 + $0xf0] sm:$0xff] }
  0x32   :  { %3307 = vst [vmem:[#allocation12_spill] sm:$0xff] %v1714_v47  ;;  %3308 = vst [vmem:[#allocation13_spill] sm:$0xff] %v1716_v46  ;;  %v1724_v58 = vld [vmem:[#allocation3 + $0xf8] sm:$0xff]  ;;  %v1730_v41 = vld [vmem:[#allocation3 + $0x100] sm:$0xff] }
  0x33   :  { %3309 = vst [vmem:[#allocation14_spill] sm:$0xff] %v1730_v41  ;;  %v1732_v53 = vld [vmem:[#allocation3 + $0x108] sm:$0xff]  ;;  %v1738_v40 = vld [vmem:[#allocation3 + $0x110] sm:$0xff]  ;;  %v1740_v57 = vld [vmem:[#allocation3 + $0x118] sm:$0xff] }
  0x34   :  { %3310 = vst [vmem:[#allocation15_spill] sm:$0xff] %v1732_v53  ;;  %3311 = vst [vmem:[#allocation16_spill] sm:$0xff] %v1738_v40  ;;  %v1746_v39 = vld [vmem:[#allocation3 + $0x120] sm:$0xff]  ;;  %v1748_v63 = vld [vmem:[#allocation3 + $0x128] sm:$0xff] }
  0x35   :  { %3312 = vst [vmem:[#allocation17_spill] sm:$0xff] %v1740_v57  ;;  %3313 = vst [vmem:[#allocation18_spill] sm:$0xff] %v1746_v39  ;;  %v1754_v38 = vld [vmem:[#allocation3 + $0x130] sm:$0xff]  ;;  %v1756_v59 = vld [vmem:[#allocation3 + $0x138] sm:$0xff] }
  0x36   :  { %3314 = vst [vmem:[#allocation19_spill] sm:$0xff] %v1748_v63  ;;  %3315 = vst [vmem:[#allocation20_spill] sm:$0xff] %v1754_v38  ;;  %v1762_v35 = vld [vmem:[#allocation3 + $0x140] sm:$0xff]  ;;  %v1764_v52 = vld [vmem:[#allocation3 + $0x148] sm:$0xff] }
  0x37   :  { %3316 = vst [vmem:[#allocation21_spill] sm:$0xff] %v1756_v59  ;;  %3317 = vst [vmem:[#allocation22_spill] sm:$0xff] %v1762_v35  ;;  %v1770_v34 = vld [vmem:[#allocation3 + $0x150] sm:$0xff]  ;;  %v1772_v50 = vld [vmem:[#allocation3 + $0x158] sm:$0xff]  ;;  %v3395_v35 = vunpack.c.h.bf16 %v1624_v5 }
  0x38   :  { %3318 = vst [vmem:[#allocation23_spill] sm:$0xff] %v1764_v52  ;;  %3319 = vst [vmem:[#allocation24_spill] sm:$0xff] %v1770_v34  ;;  %v1778_v33 = vld [vmem:[#allocation3 + $0x160] sm:$0xff]  ;;  %v1780_v45 = vld [vmem:[#allocation3 + $0x168] sm:$0xff] }
  0x39   :  { %3320 = vst [vmem:[#allocation25_spill] sm:$0xff] %v1772_v50  ;;  %3321 = vst [vmem:[#allocation26_spill] sm:$0xff] %v1778_v33  ;;  %v1786_v32 = vld [vmem:[#allocation3 + $0x170] sm:$0xff]  ;;  %v1788_v44 = vld [vmem:[#allocation3 + $0x178] sm:$0xff] }
  0x3a   :  { %3322 = vst [vmem:[#allocation27_spill] sm:$0xff] %v1780_v45  ;;  %3323 = vst [vmem:[#allocation28_spill] sm:$0xff] %v1786_v32  ;;  %v1794_v29 = vld [vmem:[#allocation3 + $0x180] sm:$0xff]  ;;  %v1796_v23 = vld [vmem:[#allocation3 + $0x188] sm:$0xff]  ;;  %v3401_v45 = vunpack.c.l.bf16 %v1652_v25 }
  0x3b   :  { %3324 = vst [vmem:[#allocation29_spill] sm:$0xff] %v1788_v44  ;;  %3325 = vst [vmem:[#allocation30_spill] sm:$0xff] %v1794_v29  ;;  %v1802_v28 = vld [vmem:[#allocation3 + $0x190] sm:$0xff]  ;;  %v1804_v22 = vld [vmem:[#allocation3 + $0x198] sm:$0xff] }
  0x3c   :  { %3326 = vst [vmem:[#allocation31_spill] sm:$0xff] %v1796_v23  ;;  %3327 = vst [vmem:[#allocation32_spill] sm:$0xff] %v1802_v28  ;;  %v1810_v27 = vld [vmem:[#allocation3 + $0x1a0] sm:$0xff]  ;;  %v1812_v21 = vld [vmem:[#allocation3 + $0x1a8] sm:$0xff] }
  0x3d   :  { %3328 = vst [vmem:[#allocation33_spill] sm:$0xff] %v1804_v22  ;;  %3329 = vst [vmem:[#allocation34_spill] sm:$0xff] %v1810_v27  ;;  %v1818_v26 = vld [vmem:[#allocation3 + $0x1b0] sm:$0xff]  ;;  %v1820_v20 = vld [vmem:[#allocation3 + $0x1b8] sm:$0xff] }
  0x3e   :  { %3330 = vst [vmem:[#allocation35_spill] sm:$0xff] %v1812_v21  ;;  %3331 = vst [vmem:[#allocation36_spill] sm:$0xff] %v1818_v26  ;;  %v1826_v52 = vld [vmem:[#allocation3 + $0x1c0] sm:$0xff]  ;;  %v1828_v17 = vld [vmem:[#allocation3 + $0x1c8] sm:$0xff] }
  0x3f   :  { %3332 = vst [vmem:[#allocation37_spill] sm:$0xff] %v1820_v20  ;;  %3333 = vst [vmem:[#allocation38_spill] sm:$0xff] %v1826_v52  ;;  %v1834_v32 = vld [vmem:[#allocation3 + $0x1d0] sm:$0xff]  ;;  %v1836_v16 = vld [vmem:[#allocation3 + $0x1d8] sm:$0xff] }
  0x40   :  { %3334 = vst [vmem:[#allocation39_spill] sm:$0xff] %v1828_v17  ;;  %3335 = vst [vmem:[#allocation40_spill] sm:$0xff] %v1834_v32  ;;  %v1842_v29 = vld [vmem:[#allocation3 + $0x1e0] sm:$0xff]  ;;  %v1844_v15 = vld [vmem:[#allocation3 + $0x1e8] sm:$0xff] }
  0x41   :  { %3336 = vst [vmem:[#allocation41_spill] sm:$0xff] %v1836_v16  ;;  %3337 = vst [vmem:[#allocation42_spill] sm:$0xff] %v1842_v29  ;;  %v1850_v28 = vld [vmem:[#allocation3 + $0x1f0] sm:$0xff]  ;;  %v1852_v14 = vld [vmem:[#allocation3 + $0x1f8] sm:$0xff] }
  0x42   :  { %3338 = vst [vmem:[#allocation43_spill] sm:$0xff] %v1844_v15  ;;  %3339 = vst [vmem:[#allocation44_spill] sm:$0xff] %v1850_v28  ;;  %v1858_v27 = vld [vmem:[#allocation3 + $0x200] sm:$0xff]  ;;  %v1860_v11 = vld [vmem:[#allocation3 + $0x208] sm:$0xff] }
  0x43   :  { %3340 = vst [vmem:[#allocation45_spill] sm:$0xff] %v1852_v14  ;;  %3341 = vst [vmem:[#allocation46_spill] sm:$0xff] %v1858_v27  ;;  %v1866_v26 = vld [vmem:[#allocation3 + $0x210] sm:$0xff]  ;;  %v1868_v10 = vld [vmem:[#allocation3 + $0x218] sm:$0xff] }
  0x44   :  { %3342 = vst [vmem:[#allocation47_spill] sm:$0xff] %v1860_v11  ;;  %3343 = vst [vmem:[#allocation48_spill] sm:$0xff] %v1866_v26  ;;  %v1874_v52 = vld [vmem:[#allocation3 + $0x220] sm:$0xff]  ;;  %v1876_v9 = vld [vmem:[#allocation3 + $0x228] sm:$0xff]  ;;  %v3371_v11 = vunpack.c.h.bf16 %v1614_v0 }
  0x45   :  { %3344 = vst [vmem:[#allocation49_spill] sm:$0xff] %v1868_v10  ;;  %3345 = vst [vmem:[#allocation50_spill] sm:$0xff] %v1874_v52  ;;  %v1882_v32 = vld [vmem:[#allocation3 + $0x230] sm:$0xff]  ;;  %v1884_v8 = vld [vmem:[#allocation3 + $0x238] sm:$0xff] }
  0x46   :  { %3346 = vst [vmem:[#allocation51_spill] sm:$0xff] %v1876_v9  ;;  %3347 = vst [vmem:[#allocation52_spill] sm:$0xff] %v1882_v32  ;;  %v1890_v29 = vld [vmem:[#allocation3 + $0x240] sm:$0xff]  ;;  %v1892_v44 = vld [vmem:[#allocation3 + $0x248] sm:$0xff]  ;;  %v3369_v9 = vunpack.c.l.bf16 %v1614_v0  ;;  %v3384_v0 = vunpack.c.h.bf16 %v1634_v12 }
  0x47   :  { %3348 = vst [vmem:[#allocation53_spill] sm:$0xff] %v1884_v8  ;;  %3349 = vst [vmem:[#allocation54_spill] sm:$0xff] %v1890_v29  ;;  %v1898_v28 = vld [vmem:[#allocation3 + $0x250] sm:$0xff]  ;;  %v1900_v23 = vld [vmem:[#allocation3 + $0x258] sm:$0xff]  ;;  %v3379_v8 = vunpack.c.h.bf16 %v1628_v7 }
  0x48   :  { %3350 = vst [vmem:[#allocation55_spill] sm:$0xff] %v1892_v44  ;;  %3351 = vst [vmem:[#allocation56_spill] sm:$0xff] %v1898_v28  ;;  %v1906_v27 = vld [vmem:[#allocation3 + $0x260] sm:$0xff]  ;;  %v1908_v22 = vld [vmem:[#allocation3 + $0x268] sm:$0xff]  ;;  %v3381_v44 = vunpack.c.l.bf16 %v1618_v2 }
  0x49   :  { %3352 = vst [vmem:[#allocation57_spill] sm:$0xff] %v1900_v23  ;;  %3353 = vst [vmem:[#allocation58_spill] sm:$0xff] %v1906_v27  ;;  %v1914_v26 = vld [vmem:[#allocation3 + $0x270] sm:$0xff]  ;;  %v1916_v21 = vld [vmem:[#allocation3 + $0x278] sm:$0xff] }
  0x4a   :  { %3354 = vst [vmem:[#allocation59_spill] sm:$0xff] %v1908_v22  ;;  %3355 = vst [vmem:[#allocation60_spill] sm:$0xff] %v1914_v26  ;;  %v1922_v52 = vld [vmem:[#allocation3 + $0x280] sm:$0xff]  ;;  %v1924_v20 = vld [vmem:[#allocation3 + $0x288] sm:$0xff]  ;;  %v3370_v22 = vunpack.c.l.bf16 %v1626_v6 }
  0x4b   :  { %3356 = vst [vmem:[#allocation61_spill] sm:$0xff] %v1916_v21  ;;  %3357 = vst [vmem:[#allocation62_spill] sm:$0xff] %v1922_v52  ;;  %v1930_v32 = vld [vmem:[#allocation3 + $0x290] sm:$0xff]  ;;  %v1932_v17 = vld [vmem:[#allocation3 + $0x298] sm:$0xff] }
  0x4c   :  { %3358 = vst [vmem:[#allocation63_spill] sm:$0xff] %v1924_v20  ;;  %3359 = vst [vmem:[#allocation64_spill] sm:$0xff] %v1930_v32  ;;  %v1938_v29 = vld [vmem:[#allocation3 + $0x2a0] sm:$0xff]  ;;  %v1940_v16 = vld [vmem:[#allocation3 + $0x2a8] sm:$0xff] }
  0x4d   :  { %3360 = vst [vmem:[#allocation65_spill] sm:$0xff] %v1932_v17  ;;  %3361 = vst [vmem:[#allocation66_spill] sm:$0xff] %v1938_v29  ;;  %v1946_v28 = vld [vmem:[#allocation3 + $0x2b0] sm:$0xff]  ;;  %v1948_v15 = vld [vmem:[#allocation3 + $0x2b8] sm:$0xff]  ;;  %v329_v29 = vadd.f32 %v3370_v22, %v3369_v9  ;;  %v3378_v22 = vunpack.c.h.bf16 %v1616_v1  ;;  %v3383_v9 = vunpack.c.h.bf16 %v1618_v2  ;;  %v3389_v2 = vunpack.c.l.bf16 %v1622_v4 }
  0x4e   :  { %3362 = vst [vmem:[#allocation67_spill] sm:$0xff] %v1940_v16  ;;  %3363 = vst [vmem:[#allocation68_spill] sm:$0xff] %v1946_v28  ;;  %v1954_v27 = vld [vmem:[#allocation3 + $0x2c0] sm:$0xff]  ;;  %v1960_v21 = vld [vmem:[#allocation3 + $0x2c8] sm:$0xff]  ;;  %v3372_v16 = vunpack.c.h.bf16 %v1626_v6  ;;  %v3376_v6 = vunpack.c.l.bf16 %v1616_v1 }
  0x4f   :  { %3364 = vst [vmem:[#allocation69_spill] sm:$0xff] %v1948_v15  ;;  %3365 = vst [vmem:[#allocation70_spill] sm:$0xff] %v1954_v27  ;;  %v1962_v26 = vld [vmem:[#allocation3 + $0x2d0] sm:$0xff]  ;;  %v1968_v20 = vld [vmem:[#allocation3 + $0x2d8] sm:$0xff]  ;;  %v350_v14 = vadd.f32 %v3379_v8, %v3378_v22  ;;  %v364_v28 = vadd.f32 %v3384_v0, %v3383_v9  ;;  %v3388_v8 = vunpack.c.h.bf16 %v1636_v13  ;;  %v3391_v9 = vunpack.c.h.bf16 %v1622_v4 }
  0x50   :  { %3366 = vst [vmem:[#allocation71_spill] sm:$0xff] %v1960_v21  ;;  %3367 = vst [vmem:[#allocation72_spill] sm:$0xff] %v1962_v26  ;;  %v336_v10 = vadd.f32 %v3372_v16, %v3371_v11  ;;  %v1984_v32 = vld [vmem:[#allocation3 + $0x2e0] sm:$0xff]  ;;  %v1990_v23 = vld [vmem:[#allocation3 + $0x2e8] sm:$0xff]  ;;  %v3377_v11 = vunpack.c.l.bf16 %v1628_v7  ;;  %v3382_v21 = vunpack.c.l.bf16 %v1634_v12  ;;  %v3387_v7 = vunpack.c.h.bf16 %v1620_v3 }
  0x51   :  { %3368 = vst [vmem:[#allocation73_spill] sm:$0xff] %v1968_v20  ;;  %3373 = vst [vmem:[#allocation74_spill] sm:$0xff] %v1984_v32  ;;  %v1992_v27 = vld [vmem:[#allocation3 + $0x2f0] sm:$0xff]  ;;  %v2004_v17 = vld [vmem:[#allocation3 + $0x2f8] sm:$0xff]  ;;  %v3385_v20 = vunpack.c.l.bf16 %v1620_v3  ;;  %v3390_v12 = vunpack.c.l.bf16 %v1642_v18  ;;  %v3392_v0 = vunpack.c.h.bf16 %v1642_v18  ;;  %v3393_v3 = vunpack.c.l.bf16 %v1624_v5 }
  0x52   :  { %3374 = vst [vmem:[#allocation75_spill] sm:$0xff] %v1990_v23  ;;  %3375 = vst [vmem:[#allocation76_spill] sm:$0xff] %v1992_v27  ;;  %v343_v16 = vadd.f32 %v3377_v11, %v3376_v6  ;;  %v357_v15 = vadd.f32 %v3382_v21, %v3381_v44  ;;  %v3386_v6 = vunpack.c.l.bf16 %v1636_v13  ;;  %v378_v11 = vadd.f32 %v3388_v8, %v3387_v7 }
  0x53   :  { %3380 = vst [vmem:[#allocation77_spill] sm:$0xff] %v2004_v17  ;;  %v330_v21 = vrot.slane %v329_v29, 4  ;;  %v337_v44 = vrot.slane %v336_v10, 4  ;;  %v365_v8 = vrot.slane %v364_v28, 4  ;;  %v385_v23 = vadd.f32 %v3390_v12, %v3389_v2 }
  0x54   :  { %v371_v1 = vadd.f32 %v3386_v6, %v3385_v20  ;;  %v344_v13 = vrot.slane %v343_v16, 4  ;;  %v351_v6 = vrot.slane %v350_v14, 4  ;;  %v358_v7 = vrot.slane %v357_v15, 4 }
  0x55   :  { %v379_v26 = vrot.slane %v378_v11, 4  ;;  %v331_v32 = vadd.f32 %v330_v21, %v329_v29  ;;  %v338_v52 = vadd.f32 %v337_v44, %v336_v10  ;;  %v392_v20 = vadd.f32 %v3392_v0, %v3391_v9 }
  0x56   :  { %v372_v22 = vrot.slane %v371_v1, 4  ;;  %v3394_v17 = vunpack.c.l.bf16 %v1644_v19  ;;  %v3396_v29 = vunpack.c.h.bf16 %v1644_v19  ;;  %v3397_v21 = vunpack.c.l.bf16 %v1650_v24 }
  0x57   :  { %v3398_v44 = vunpack.c.l.bf16 %v1674_v42  ;;  %v3399_v4 = vunpack.c.h.bf16 %v1650_v24  ;;  %v3400_v18 = vunpack.c.h.bf16 %v1674_v42  ;;  %v345_v9 = vadd.f32 %v344_v13, %v343_v16 }
  0x58   :  { %v399_v27 = vadd.f32 %v3394_v17, %v3393_v3  ;;  %v406_v10 = vadd.f32 %v3396_v29, %v3395_v35  ;;  %v352_v0 = vadd.f32 %v351_v6, %v350_v14  ;;  %v3402_v17 = vunpack.c.l.bf16 %v1676_v43 }
  0x59   :  { %v413_v2 = vadd.f32 %v3398_v44, %v3397_v21  ;;  %v420_v12 = vadd.f32 %v3400_v18, %v3399_v4  ;;  %v3403_v19 = vunpack.c.h.bf16 %v1652_v25  ;;  %v3404_v35 = vunpack.c.h.bf16 %v1676_v43 }
  0x5a   :  { %v427_v5 = vadd.f32 %v3402_v17, %v3401_v45  ;;  %v359_v29 = vadd.f32 %v358_v7, %v357_v15  ;;  %v366_v59 = vadd.f32 %v365_v8, %v364_v28  ;;  %v373_v21 = vadd.f32 %v372_v22, %v371_v1 }
  0x5b   :  { %v434_v3 = vadd.f32 %v3404_v35, %v3403_v19  ;;  %v380_v44 = vadd.f32 %v379_v26, %v378_v11  ;;  %v332_v24 = vrot.slane %v331_v32, 2  ;;  %v339_v33 = vrot.slane %v338_v52, 2 }
  0x5c   :  { %v386_v42 = vrot.slane %v385_v23, 4  ;;  %v393_v4 = vrot.slane %v392_v20, 4  ;;  %v400_v16 = vrot.slane %v399_v27, 4  ;;  %v407_v14 = vrot.slane %v406_v10, 4 }
  0x5d   :  { %v414_v13 = vrot.slane %v413_v2, 4  ;;  %v421_v6 = vrot.slane %v420_v12, 4  ;;  %v346_v18 = vrot.slane %v345_v9, 2  ;;  %v353_v38 = vrot.slane %v352_v0, 2 }
  0x5e   :  { %v428_v45 = vrot.slane %v427_v5, 4  ;;  %v435_v17 = vrot.slane %v434_v3, 4  ;;  %v360_v25 = vrot.slane %v359_v29, 2  ;;  %v367_v50 = vrot.slane %v366_v59, 2 }
  0x5f   :  { %v374_v43 = vrot.slane %v373_v21, 2  ;;  %v381_v19 = vrot.slane %v380_v44, 2  ;;  %v333_v15 = vadd.f32 %v332_v24, %v331_v32  ;;  %v340_v28 = vadd.f32 %v339_v33, %v338_v52 }
  0x60   :  { %v387_v1 = vadd.f32 %v386_v42, %v385_v23  ;;  %v394_v26 = vadd.f32 %v393_v4, %v392_v20  ;;  %v401_v11 = vadd.f32 %v400_v16, %v399_v27  ;;  %v408_v22 = vadd.f32 %v407_v14, %v406_v10 }
  0x61   :  { %v415_v7 = vadd.f32 %v414_v13, %v413_v2  ;;  %v422_v8 = vadd.f32 %v421_v6, %v420_v12  ;;  %v347_v35 = vadd.f32 %v346_v18, %v345_v9  ;;  %v354_v63 = vadd.f32 %v353_v38, %v352_v0 }
  0x62   :  { %v429_v34 = vadd.f32 %v428_v45, %v427_v5  ;;  %v436_v39 = vadd.f32 %v435_v17, %v434_v3  ;;  %v361_v57 = vadd.f32 %v360_v25, %v359_v29  ;;  %v368_v46 = vadd.f32 %v367_v50, %v366_v59 }
  0x63   :  { %v375_v40 = vadd.f32 %v374_v43, %v373_v21  ;;  %v382_v47 = vadd.f32 %v381_v19, %v380_v44  ;;  %v334_v53 = vrot.slane %v333_v15, 1  ;;  %v341_v56 = vrot.slane %v340_v28, 1 }
  0x64   :  { %v388_v41 = vrot.slane %v387_v1, 2  ;;  %v395_v51 = vrot.slane %v394_v26, 2  ;;  %v402_v32 = vrot.slane %v401_v11, 2  ;;  %v409_v33 = vrot.slane %v408_v22, 2 }
  0x65   :  { %v416_v23 = vrot.slane %v415_v7, 2  ;;  %v423_v52 = vrot.slane %v422_v8, 2  ;;  %v348_v27 = vrot.slane %v347_v35, 1  ;;  %v355_v20 = vrot.slane %v354_v63, 1 }
  0x66   :  { %v430_v10 = vrot.slane %v429_v34, 2  ;;  %v437_v2 = vrot.slane %v436_v39, 2  ;;  %v362_v12 = vrot.slane %v361_v57, 1  ;;  %v369_v38 = vrot.slane %v368_v46, 1 }
  0x67   :  { %v376_v9 = vrot.slane %v375_v40, 1  ;;  %v383_v0 = vrot.slane %v382_v47, 1  ;;  %v2062_v5 = vadd.f32 %v334_v53, %v333_v15  ;;  %v2064_v50 = vadd.f32 %v341_v56, %v340_v28 }
  0x68   :  { %v389_v59 = vadd.f32 %v388_v41, %v387_v1  ;;  %v396_v3 = vadd.f32 %v395_v51, %v394_v26  ;;  %v403_v29 = vadd.f32 %v402_v32, %v401_v11  ;;  %v410_v21 = vadd.f32 %v409_v33, %v408_v22 }
  0x69   :  { %v417_v44 = vadd.f32 %v416_v23, %v415_v7  ;;  %v424_v24 = vadd.f32 %v423_v52, %v422_v8  ;;  %v2066_v42 = vadd.f32 %v348_v27, %v347_v35  ;;  %v2068_v4 = vadd.f32 %v355_v20, %v354_v63 }
  0x6a   :  { %v431_v16 = vadd.f32 %v430_v10, %v429_v34  ;;  %v438_v14 = vadd.f32 %v437_v2, %v436_v39  ;;  %v2070_v13 = vadd.f32 %v362_v12, %v361_v57  ;;  %v2072_v6 = vadd.f32 %v369_v38, %v368_v46 }
  0x6b   :  { %v2074_v53 = vadd.f32 %v376_v9, %v375_v40  ;;  %v2076_v56 = vadd.f32 %v383_v0, %v382_v47  ;;  %v390_v41 = vrot.slane %v389_v59, 1  ;;  %v397_v51 = vrot.slane %v396_v3, 1 }
  0x6c   :  { %v3405_v18 = vunpack.c.l.bf16 %v1658_v30  ;;  %v3406_v45 = vunpack.c.l.bf16 %v1682_v48  ;;  %v3407_v63 = vunpack.c.h.bf16 %v1658_v30  ;;  %v3408_v34 = vunpack.c.h.bf16 %v1682_v48 }
  0x6d   :  { %v404_v57 = vrot.slane %v403_v29, 1  ;;  %v411_v25 = vrot.slane %v410_v21, 1  ;;  %v418_v46 = vrot.slane %v417_v44, 1  ;;  %v425_v43 = vrot.slane %v424_v24, 1 }
  0x6e   :  { %v441_v17 = vadd.f32 %v3406_v45, %v3405_v18  ;;  %v448_v39 = vadd.f32 %v3408_v34, %v3407_v63  ;;  %v432_v40 = vrot.slane %v431_v16, 1  ;;  %v439_v19 = vrot.slane %v438_v14, 1 }
  0x6f   :  { %v3409_v47 = vunpack.c.l.bf16 %v1660_v31  ;;  %v3410_v15 = vunpack.c.l.bf16 %v1684_v49  ;;  %v3411_v1 = vunpack.c.h.bf16 %v1660_v31  ;;  %v3412_v26 = vunpack.c.h.bf16 %v1684_v49 }
  0x70   :  { %v3413_v30 = vunpack.c.l.bf16 %v1666_v36  ;;  %v3414_v48 = vunpack.c.l.bf16 %v1690_v54  ;;  %v3415_v7 = vunpack.c.h.bf16 %v1666_v36  ;;  %v3416_v8 = vunpack.c.h.bf16 %v1690_v54 }
  0x71   :  { %v455_v28 = vadd.f32 %v3410_v15, %v3409_v47  ;;  %v462_v11 = vadd.f32 %v3412_v26, %v3411_v1  ;;  %v3417_v32 = vunpack.c.l.bf16 %v1668_v37  ;;  %v3418_v33 = vunpack.c.l.bf16 %v1692_v55 }
  0x72   :  { %v469_v22 = vadd.f32 %v3414_v48, %v3413_v30  ;;  %v476_v35 = vadd.f32 %v3416_v8, %v3415_v7  ;;  %v3419_v31 = vunpack.c.h.bf16 %v1668_v37  ;;  %v3420_v49 = vunpack.c.h.bf16 %v1692_v55  ;;  %v3439_v30 = vld [vmem:[#allocation11_spill] sm:$0xff] }
  0x73   :  { %v483_v23 = vadd.f32 %v3418_v33, %v3417_v32  ;;  %v2110_v27 = vadd.f32 %v390_v41, %v389_v59  ;;  %v2112_v20 = vadd.f32 %v397_v51, %v396_v3  ;;  %v442_v10 = vrot.slane %v441_v17, 4  ;;  %v3441_v7 = vld [vmem:[#allocation15_spill] sm:$0xff] }
  0x74   :  { %v490_v52 = vadd.f32 %v3420_v49, %v3419_v31  ;;  %v449_v2 = vrot.slane %v448_v39, 4  ;;  %v2114_v36 = vadd.f32 %v404_v57, %v403_v29  ;;  %v2116_v54 = vadd.f32 %v411_v25, %v410_v21 }
  0x75   :  { %v2118_v12 = vadd.f32 %v418_v46, %v417_v44  ;;  %v2120_v38 = vadd.f32 %v425_v43, %v424_v24  ;;  %v2122_v9 = vadd.f32 %v432_v40, %v431_v16  ;;  %v2124_v37 = vadd.f32 %v439_v19, %v438_v14  ;;  %v3433_v46 = vld [vmem:[#allocation10_spill] sm:$0xff] }
  0x76   :  { %v456_v55 = vrot.slane %v455_v28, 4  ;;  %v463_v0 = vrot.slane %v462_v11, 4  ;;  %v470_v59 = vrot.slane %v469_v22, 4  ;;  %v477_v41 = vrot.slane %v476_v35, 4  ;;  %v3435_v40 = vld [vmem:[#allocation14_spill] sm:$0xff] }
  0x77   :  { %3421 = vst [vmem:[#allocation78_spill] sm:$0xff] %v2118_v12  ;;  %3422 = vst [vmem:[#allocation79_spill] sm:$0xff] %v2120_v38  ;;  %v484_v3 = vrot.slane %v483_v23, 4  ;;  %v491_v51 = vrot.slane %v490_v52, 4  ;;  %v443_v18 = vadd.f32 %v442_v10, %v441_v17  ;;  %v450_v45 = vadd.f32 %v449_v2, %v448_v39 }
  0x78   :  { %3423 = vst [vmem:[#allocation80_spill] sm:$0xff] %v2122_v9  ;;  %3424 = vst [vmem:[#allocation81_spill] sm:$0xff] %v2124_v37  ;;  %v3425_v29 = vunpack.c.l.bf16 %v1698_v60  ;;  %v3426_v21 = vunpack.c.l.bf16 %v1722_v62  ;;  %v3427_v24 = vunpack.c.h.bf16 %v1698_v60  ;;  %v3428_v16 = vunpack.c.h.bf16 %v1722_v62 }
  0x79   :  { %v3429_v14 = vunpack.c.l.bf16 %v1700_v61  ;;  %v3430_v34 = vunpack.c.l.bf16 %v1724_v58  ;;  %v3431_v25 = vunpack.c.h.bf16 %v1700_v61  ;;  %v3432_v17 = vunpack.c.h.bf16 %v1724_v58 }
  0x7a   :  { %v497_v44 = vadd.f32 %v3426_v21, %v3425_v29  ;;  %v504_v63 = vadd.f32 %v3428_v16, %v3427_v24  ;;  %v3434_v43 = vunpack.c.l.bf16 %v3433_v46  ;;  %v3436_v19 = vunpack.c.l.bf16 %v3435_v40 }
  0x7b   :  { %v511_v57 = vadd.f32 %v3430_v34, %v3429_v14  ;;  %v518_v39 = vadd.f32 %v3432_v17, %v3431_v25  ;;  %v3437_v60 = vunpack.c.h.bf16 %v3433_v46  ;;  %v3438_v62 = vunpack.c.h.bf16 %v3435_v40 }
  0x7c   :  { %v525_v47 = vadd.f32 %v3436_v19, %v3434_v43  ;;  %v457_v1 = vadd.f32 %v456_v55, %v455_v28  ;;  %v464_v26 = vadd.f32 %v463_v0, %v462_v11  ;;  %v3440_v48 = vunpack.c.l.bf16 %v3439_v30 }
  0x7d   :  { %v532_v15 = vadd.f32 %v3438_v62, %v3437_v60  ;;  %v3442_v8 = vunpack.c.l.bf16 %v3441_v7  ;;  %v3443_v58 = vunpack.c.h.bf16 %v3439_v30  ;;  %v3444_v32 = vunpack.c.h.bf16 %v3441_v7 }
  0x7e   :  { %v471_v31 = vadd.f32 %v470_v59, %v469_v22  ;;  %v478_v49 = vadd.f32 %v477_v41, %v476_v35  ;;  %v485_v10 = vadd.f32 %v484_v3, %v483_v23  ;;  %v492_v2 = vadd.f32 %v491_v51, %v490_v52 }
  0x7f   :  { %v539_v61 = vadd.f32 %v3442_v8, %v3440_v48  ;;  %v546_v33 = vadd.f32 %v3444_v32, %v3443_v58  ;;  %v444_v29 = vrot.slane %v443_v18, 2  ;;  %v451_v21 = vrot.slane %v450_v45, 2 }
  0x80   :  { %v498_v24 = vrot.slane %v497_v44, 4  ;;  %v505_v16 = vrot.slane %v504_v63, 4  ;;  %v512_v28 = vrot.slane %v511_v57, 4  ;;  %v519_v11 = vrot.slane %v518_v39, 4 }
  0x81   :  { %v526_v55 = vrot.slane %v525_v47, 4  ;;  %v533_v0 = vrot.slane %v532_v15, 4  ;;  %v458_v14 = vrot.slane %v457_v1, 2  ;;  %v465_v34 = vrot.slane %v464_v26, 2 }
  0x82   :  { %v540_v25 = vrot.slane %v539_v61, 4  ;;  %v547_v17 = vrot.slane %v546_v33, 4  ;;  %v472_v46 = vrot.slane %v471_v31, 2  ;;  %v479_v43 = vrot.slane %v478_v49, 2 }
  0x83   :  { %v486_v40 = vrot.slane %v485_v10, 2  ;;  %v493_v19 = vrot.slane %v492_v2, 2  ;;  %v445_v22 = vadd.f32 %v444_v29, %v443_v18  ;;  %v452_v35 = vadd.f32 %v451_v21, %v450_v45 }
  0x84   :  { %v499_v23 = vadd.f32 %v498_v24, %v497_v44  ;;  %v506_v52 = vadd.f32 %v505_v16, %v504_v63  ;;  %v513_v59 = vadd.f32 %v512_v28, %v511_v57  ;;  %v520_v41 = vadd.f32 %v519_v11, %v518_v39 }
  0x85   :  { %v527_v3 = vadd.f32 %v526_v55, %v525_v47  ;;  %v534_v51 = vadd.f32 %v533_v0, %v532_v15  ;;  %v459_v60 = vadd.f32 %v458_v14, %v457_v1  ;;  %v466_v62 = vadd.f32 %v465_v34, %v464_v26 }
  0x86   :  { %v541_v30 = vadd.f32 %v540_v25, %v539_v61  ;;  %v548_v48 = vadd.f32 %v547_v17, %v546_v33  ;;  %v473_v7 = vadd.f32 %v472_v46, %v471_v31  ;;  %v480_v8 = vadd.f32 %v479_v43, %v478_v49  ;;  %v3453_v25 = vld [vmem:[#allocation12_spill] sm:$0xff] }
  0x87   :  { %v487_v58 = vadd.f32 %v486_v40, %v485_v10  ;;  %v494_v32 = vadd.f32 %v493_v19, %v492_v2  ;;  %v446_v37 = vrot.slane %v445_v22, 1  ;;  %v453_v9 = vrot.slane %v452_v35, 1  ;;  %v3455_v46 = vld [vmem:[#allocation16_spill] sm:$0xff] }
  0x88   :  { %v500_v38 = vrot.slane %v499_v23, 2  ;;  %v507_v12 = vrot.slane %v506_v52, 2  ;;  %v514_v18 = vrot.slane %v513_v59, 2  ;;  %v521_v45 = vrot.slane %v520_v41, 2 }
  0x89   :  { %v528_v44 = vrot.slane %v527_v3, 2  ;;  %v535_v63 = vrot.slane %v534_v51, 2  ;;  %v460_v57 = vrot.slane %v459_v60, 1  ;;  %v467_v39 = vrot.slane %v466_v62, 1 }
  0x8a   :  { %v542_v47 = vrot.slane %v541_v30, 2  ;;  %v549_v15 = vrot.slane %v548_v48, 2  ;;  %v474_v1 = vrot.slane %v473_v7, 1  ;;  %v481_v26 = vrot.slane %v480_v8, 1 }
  0x8b   :  { %v488_v61 = vrot.slane %v487_v58, 1  ;;  %v495_v33 = vrot.slane %v494_v32, 1  ;;  %v2158_v31 = vadd.f32 %v446_v37, %v445_v22  ;;  %v2160_v49 = vadd.f32 %v453_v9, %v452_v35 }
  0x8c   :  { %v501_v10 = vadd.f32 %v500_v38, %v499_v23  ;;  %v508_v2 = vadd.f32 %v507_v12, %v506_v52  ;;  %v515_v29 = vadd.f32 %v514_v18, %v513_v59  ;;  %v522_v21 = vadd.f32 %v521_v45, %v520_v41  ;;  %v3465_v18 = vld [vmem:[#allocation18_spill] sm:$0xff] }
  0x8d   :  { %3445 = vst [vmem:[#allocation10_spill] sm:$0xff] %v2158_v31  ;;  %3446 = vst [vmem:[#allocation14_spill] sm:$0xff] %v2160_v49  ;;  %v529_v24 = vadd.f32 %v528_v44, %v527_v3  ;;  %v536_v16 = vadd.f32 %v535_v63, %v534_v51  ;;  %v2162_v28 = vadd.f32 %v460_v57, %v459_v60  ;;  %v3454_v17 = vunpack.c.l.bf16 %v3453_v25  ;;  %v3459_v60 = vld [vmem:[#allocation13_spill] sm:$0xff]  ;;  %v3467_v44 = vld [vmem:[#allocation24_spill] sm:$0xff] }
  0x8e   :  { %v2164_v11 = vadd.f32 %v467_v39, %v466_v62  ;;  %v543_v55 = vadd.f32 %v542_v47, %v541_v30  ;;  %v550_v0 = vadd.f32 %v549_v15, %v548_v48  ;;  %v2166_v14 = vadd.f32 %v474_v1, %v473_v7  ;;  %v3461_v30 = vld [vmem:[#allocation17_spill] sm:$0xff]  ;;  %v3471_v1 = vld [vmem:[#allocation19_spill] sm:$0xff] }
  0x8f   :  { %3447 = vst [vmem:[#allocation11_spill] sm:$0xff] %v2162_v28  ;;  %v2168_v34 = vadd.f32 %v481_v26, %v480_v8  ;;  %v2170_v37 = vadd.f32 %v488_v61, %v487_v58  ;;  %v2172_v9 = vadd.f32 %v495_v33, %v494_v32  ;;  %v502_v38 = vrot.slane %v501_v10, 1  ;;  %v3473_v61 = vld [vmem:[#allocation25_spill] sm:$0xff] }
  0x90   :  { %3448 = vst [vmem:[#allocation15_spill] sm:$0xff] %v2164_v11  ;;  %3449 = vst [vmem:[#allocation82_spill] sm:$0xff] %v2166_v14  ;;  %v509_v12 = vrot.slane %v508_v2, 1  ;;  %v3456_v43 = vunpack.c.l.bf16 %v3455_v46  ;;  %v3457_v19 = vunpack.c.h.bf16 %v3453_v25  ;;  %v3458_v22 = vunpack.c.h.bf16 %v3455_v46 }
  0x91   :  { %3450 = vst [vmem:[#allocation83_spill] sm:$0xff] %v2168_v34  ;;  %3451 = vst [vmem:[#allocation84_spill] sm:$0xff] %v2170_v37  ;;  %v516_v23 = vrot.slane %v515_v29, 1  ;;  %v523_v52 = vrot.slane %v522_v21, 1  ;;  %v530_v59 = vrot.slane %v529_v24, 1  ;;  %v537_v41 = vrot.slane %v536_v16, 1 }
  0x92   :  { %3452 = vst [vmem:[#allocation85_spill] sm:$0xff] %v2172_v9  ;;  %v553_v40 = vadd.f32 %v3456_v43, %v3454_v17  ;;  %v560_v35 = vadd.f32 %v3458_v22, %v3457_v19  ;;  %v544_v3 = vrot.slane %v543_v55, 1  ;;  %v551_v51 = vrot.slane %v550_v0, 1 }
  0x93   :  { %v3460_v62 = vunpack.c.l.bf16 %v3459_v60  ;;  %v3462_v48 = vunpack.c.l.bf16 %v3461_v30  ;;  %v3463_v8 = vunpack.c.h.bf16 %v3459_v60  ;;  %v3464_v58 = vunpack.c.h.bf16 %v3461_v30 }
  0x94   :  { %v3466_v45 = vunpack.c.l.bf16 %v3465_v18  ;;  %v3468_v63 = vunpack.c.l.bf16 %v3467_v44  ;;  %v3469_v39 = vunpack.c.h.bf16 %v3465_v18  ;;  %v3470_v47 = vunpack.c.h.bf16 %v3467_v44 }
  0x95   :  { %v567_v7 = vadd.f32 %v3462_v48, %v3460_v62  ;;  %v574_v32 = vadd.f32 %v3464_v58, %v3463_v8  ;;  %v3472_v26 = vunpack.c.l.bf16 %v3471_v1  ;;  %v3474_v33 = vunpack.c.l.bf16 %v3473_v61 }
  0x96   :  { %v581_v57 = vadd.f32 %v3468_v63, %v3466_v45  ;;  %v588_v15 = vadd.f32 %v3470_v47, %v3469_v39  ;;  %v3475_v17 = vunpack.c.h.bf16 %v3471_v1  ;;  %v3476_v46 = vunpack.c.h.bf16 %v3473_v61  ;;  %v3497_v61 = vld [vmem:[#allocation22_spill] sm:$0xff] }
  0x97   :  { %v595_v25 = vadd.f32 %v3474_v33, %v3472_v26  ;;  %v2206_v19 = vadd.f32 %v502_v38, %v501_v10  ;;  %v2208_v22 = vadd.f32 %v509_v12, %v508_v2  ;;  %v554_v60 = vrot.slane %v553_v40, 4 }
  0x98   :  { %v602_v43 = vadd.f32 %v3476_v46, %v3475_v17  ;;  %v561_v62 = vrot.slane %v560_v35, 4  ;;  %v2210_v30 = vadd.f32 %v516_v23, %v515_v29  ;;  %v2212_v48 = vadd.f32 %v523_v52, %v522_v21  ;;  %v3485_v29 = vld [vmem:[#allocation20_spill] sm:$0xff]  ;;  %v3487_v21 = vld [vmem:[#allocation26_spill] sm:$0xff] }
  0x99   :  { %3477 = vst [vmem:[#allocation12_spill] sm:$0xff] %v2206_v19  ;;  %3478 = vst [vmem:[#allocation16_spill] sm:$0xff] %v2208_v22  ;;  %v2214_v8 = vadd.f32 %v530_v59, %v529_v24  ;;  %v2216_v58 = vadd.f32 %v537_v41, %v536_v16  ;;  %v2218_v18 = vadd.f32 %v544_v3, %v543_v55  ;;  %v568_v44 = vrot.slane %v567_v7, 4  ;;  %v3493_v3 = vld [vmem:[#allocation27_spill] sm:$0xff]  ;;  %v3499_v17 = vld [vmem:[#allocation28_spill] sm:$0xff] }
  0x9a   :  { %3479 = vst [vmem:[#allocation13_spill] sm:$0xff] %v2210_v30  ;;  %3480 = vst [vmem:[#allocation17_spill] sm:$0xff] %v2212_v48  ;;  %v2220_v45 = vadd.f32 %v551_v51, %v550_v0  ;;  %v575_v63 = vrot.slane %v574_v32, 4  ;;  %v582_v10 = vrot.slane %v581_v57, 4  ;;  %v589_v38 = vrot.slane %v588_v15, 4  ;;  %v3491_v0 = vld [vmem:[#allocation21_spill] sm:$0xff] }
  0x9b   :  { %3481 = vst [vmem:[#allocation18_spill] sm:$0xff] %v2214_v8  ;;  %3482 = vst [vmem:[#allocation24_spill] sm:$0xff] %v2216_v58  ;;  %v596_v2 = vrot.slane %v595_v25, 4  ;;  %v603_v12 = vrot.slane %v602_v43, 4  ;;  %v555_v39 = vadd.f32 %v554_v60, %v553_v40  ;;  %v562_v47 = vadd.f32 %v561_v62, %v560_v35 }
  0x9c   :  { %3483 = vst [vmem:[#allocation19_spill] sm:$0xff] %v2218_v18  ;;  %3484 = vst [vmem:[#allocation25_spill] sm:$0xff] %v2220_v45  ;;  %v3486_v23 = vunpack.c.l.bf16 %v3485_v29  ;;  %v3488_v52 = vunpack.c.l.bf16 %v3487_v21  ;;  %v3489_v16 = vunpack.c.h.bf16 %v3485_v29  ;;  %v3490_v55 = vunpack.c.h.bf16 %v3487_v21 }
  0x9d   :  { %v3492_v41 = vunpack.c.l.bf16 %v3491_v0  ;;  %v3494_v51 = vunpack.c.l.bf16 %v3493_v3  ;;  %v3495_v26 = vunpack.c.h.bf16 %v3491_v0  ;;  %v3496_v40 = vunpack.c.h.bf16 %v3493_v3 }
  0x9e   :  { %v609_v24 = vadd.f32 %v3488_v52, %v3486_v23  ;;  %v616_v59 = vadd.f32 %v3490_v55, %v3489_v16  ;;  %v3498_v33 = vunpack.c.l.bf16 %v3497_v61  ;;  %v3500_v46 = vunpack.c.l.bf16 %v3499_v17  ;;  %v3503_v16 = vld [vmem:[#allocation23_spill] sm:$0xff] }
  0x9f   :  { %v623_v1 = vadd.f32 %v3494_v51, %v3492_v41  ;;  %v630_v35 = vadd.f32 %v3496_v40, %v3495_v26  ;;  %v3501_v62 = vunpack.c.h.bf16 %v3497_v61  ;;  %v3502_v29 = vunpack.c.h.bf16 %v3499_v17  ;;  %v3505_v41 = vld [vmem:[#allocation29_spill] sm:$0xff] }
  0xa0   :  { %v637_v60 = vadd.f32 %v3500_v46, %v3498_v33  ;;  %v569_v21 = vadd.f32 %v568_v44, %v567_v7  ;;  %v576_v52 = vadd.f32 %v575_v63, %v574_v32  ;;  %v3504_v55 = vunpack.c.l.bf16 %v3503_v16 }
  0xa1   :  { %v644_v23 = vadd.f32 %v3502_v29, %v3501_v62  ;;  %v3506_v51 = vunpack.c.l.bf16 %v3505_v41  ;;  %v3507_v3 = vunpack.c.h.bf16 %v3503_v16  ;;  %v3508_v26 = vunpack.c.h.bf16 %v3505_v41 }
  0xa2   :  { %v583_v45 = vadd.f32 %v582_v10, %v581_v57  ;;  %v590_v18 = vadd.f32 %v589_v38, %v588_v15  ;;  %v597_v33 = vadd.f32 %v596_v2, %v595_v25  ;;  %v604_v46 = vadd.f32 %v603_v12, %v602_v43 }
  0xa3   :  { %v651_v0 = vadd.f32 %v3506_v51, %v3504_v55  ;;  %v658_v40 = vadd.f32 %v3508_v26, %v3507_v3  ;;  %v556_v61 = vrot.slane %v555_v39, 2  ;;  %v563_v58 = vrot.slane %v562_v47, 2 }
  0xa4   :  { %v610_v17 = vrot.slane %v609_v24, 4  ;;  %v617_v62 = vrot.slane %v616_v59, 4  ;;  %v624_v7 = vrot.slane %v623_v1, 4  ;;  %v631_v32 = vrot.slane %v630_v35, 4 }
  0xa5   :  { %v638_v44 = vrot.slane %v637_v60, 4  ;;  %v645_v63 = vrot.slane %v644_v23, 4  ;;  %v570_v29 = vrot.slane %v569_v21, 2  ;;  %v577_v8 = vrot.slane %v576_v52, 2 }
  0xa6   :  { %v652_v55 = vrot.slane %v651_v0, 4  ;;  %v659_v51 = vrot.slane %v658_v40, 4  ;;  %v584_v16 = vrot.slane %v583_v45, 2  ;;  %v591_v48 = vrot.slane %v590_v18, 2 }
  0xa7   :  { %v598_v41 = vrot.slane %v597_v33, 2  ;;  %v605_v3 = vrot.slane %v604_v46, 2  ;;  %v557_v57 = vadd.f32 %v556_v61, %v555_v39  ;;  %v564_v15 = vadd.f32 %v563_v58, %v562_v47 }
  0xa8   :  { %v611_v25 = vadd.f32 %v610_v17, %v609_v24  ;;  %v618_v43 = vadd.f32 %v617_v62, %v616_v59  ;;  %v625_v10 = vadd.f32 %v624_v7, %v623_v1  ;;  %v632_v38 = vadd.f32 %v631_v32, %v630_v35 }
  0xa9   :  { %v639_v2 = vadd.f32 %v638_v44, %v637_v60  ;;  %v646_v12 = vadd.f32 %v645_v63, %v644_v23  ;;  %v571_v26 = vadd.f32 %v570_v29, %v569_v21  ;;  %v578_v30 = vadd.f32 %v577_v8, %v576_v52  ;;  %v3517_v29 = vld [vmem:[#allocation30_spill] sm:$0xff] }
  0xaa   :  { %v653_v22 = vadd.f32 %v652_v55, %v651_v0  ;;  %v660_v19 = vadd.f32 %v659_v51, %v658_v40  ;;  %v585_v9 = vadd.f32 %v584_v16, %v583_v45  ;;  %v592_v37 = vadd.f32 %v591_v48, %v590_v18  ;;  %v3519_v51 = vld [vmem:[#allocation36_spill] sm:$0xff] }
  0xab   :  { %v599_v34 = vadd.f32 %v598_v41, %v597_v33  ;;  %v606_v14 = vadd.f32 %v605_v3, %v604_v46  ;;  %v558_v11 = vrot.slane %v557_v57, 1  ;;  %v565_v28 = vrot.slane %v564_v15, 1 }
  0xac   :  { %v612_v49 = vrot.slane %v611_v25, 2  ;;  %v619_v31 = vrot.slane %v618_v43, 2  ;;  %v626_v39 = vrot.slane %v625_v10, 2  ;;  %v633_v58 = vrot.slane %v632_v38, 2 }
  0xad   :  { %v640_v47 = vrot.slane %v639_v2, 2  ;;  %v647_v24 = vrot.slane %v646_v12, 2  ;;  %v572_v59 = vrot.slane %v571_v26, 1  ;;  %v579_v1 = vrot.slane %v578_v30, 1 }
  0xae   :  { %v654_v35 = vrot.slane %v653_v22, 2  ;;  %v661_v60 = vrot.slane %v660_v19, 2  ;;  %v586_v23 = vrot.slane %v585_v9, 1  ;;  %v593_v8 = vrot.slane %v592_v37, 1 }
  0xaf   :  { %v600_v21 = vrot.slane %v599_v34, 1  ;;  %v607_v52 = vrot.slane %v606_v14, 1  ;;  %v2254_v45 = vadd.f32 %v558_v11, %v557_v57  ;;  %v2256_v48 = vadd.f32 %v565_v28, %v564_v15 }
  0xb0   :  { %v613_v18 = vadd.f32 %v612_v49, %v611_v25  ;;  %v620_v0 = vadd.f32 %v619_v31, %v618_v43  ;;  %v627_v40 = vadd.f32 %v626_v39, %v625_v10  ;;  %v634_v33 = vadd.f32 %v633_v58, %v632_v38  ;;  %v3525_v43 = vld [vmem:[#allocation37_spill] sm:$0xff]  ;;  %v3529_v39 = vld [vmem:[#allocation32_spill] sm:$0xff] }
  0xb1   :  { %3509 = vst [vmem:[#allocation20_spill] sm:$0xff] %v2254_v45  ;;  %3510 = vst [vmem:[#allocation26_spill] sm:$0xff] %v2256_v48  ;;  %v641_v46 = vadd.f32 %v640_v47, %v639_v2  ;;  %v648_v61 = vadd.f32 %v647_v24, %v646_v12  ;;  %v2258_v17 = vadd.f32 %v572_v59, %v571_v26  ;;  %v3518_v55 = vunpack.c.l.bf16 %v3517_v29  ;;  %v3531_v47 = vld [vmem:[#allocation38_spill] sm:$0xff] }
  0xb2   :  { %v2260_v62 = vadd.f32 %v579_v1, %v578_v30  ;;  %v655_v7 = vadd.f32 %v654_v35, %v653_v22  ;;  %v662_v32 = vadd.f32 %v661_v60, %v660_v19  ;;  %v2262_v44 = vadd.f32 %v586_v23, %v585_v9  ;;  %v3535_v23 = vld [vmem:[#allocation33_spill] sm:$0xff] }
  0xb3   :  { %3511 = vst [vmem:[#allocation21_spill] sm:$0xff] %v2258_v17  ;;  %v2264_v63 = vadd.f32 %v593_v8, %v592_v37  ;;  %v2266_v11 = vadd.f32 %v600_v21, %v599_v34  ;;  %v2268_v28 = vadd.f32 %v607_v52, %v606_v14  ;;  %v614_v49 = vrot.slane %v613_v18, 1  ;;  %v3523_v14 = vld [vmem:[#allocation31_spill] sm:$0xff] }
  0xb4   :  { %3512 = vst [vmem:[#allocation27_spill] sm:$0xff] %v2260_v62  ;;  %3513 = vst [vmem:[#allocation22_spill] sm:$0xff] %v2262_v44  ;;  %v621_v31 = vrot.slane %v620_v0, 1  ;;  %v3520_v16 = vunpack.c.l.bf16 %v3519_v51  ;;  %v3521_v30 = vunpack.c.h.bf16 %v3517_v29  ;;  %v3522_v22 = vunpack.c.h.bf16 %v3519_v51  ;;  %v3537_v21 = vld [vmem:[#allocation39_spill] sm:$0xff] }
  0xb5   :  { %3514 = vst [vmem:[#allocation28_spill] sm:$0xff] %v2264_v63  ;;  %3515 = vst [vmem:[#allocation23_spill] sm:$0xff] %v2266_v11  ;;  %v628_v9 = vrot.slane %v627_v40, 1  ;;  %v635_v3 = vrot.slane %v634_v33, 1  ;;  %v642_v37 = vrot.slane %v641_v46, 1  ;;  %v649_v57 = vrot.slane %v648_v61, 1 }
  0xb6   :  { %3516 = vst [vmem:[#allocation29_spill] sm:$0xff] %v2268_v28  ;;  %v665_v41 = vadd.f32 %v3520_v16, %v3518_v55  ;;  %v672_v19 = vadd.f32 %v3522_v22, %v3521_v30  ;;  %v656_v34 = vrot.slane %v655_v7, 1  ;;  %v663_v15 = vrot.slane %v662_v32, 1 }
  0xb7   :  { %v3524_v25 = vunpack.c.l.bf16 %v3523_v14  ;;  %v3526_v10 = vunpack.c.l.bf16 %v3525_v43  ;;  %v3527_v2 = vunpack.c.h.bf16 %v3523_v14  ;;  %v3528_v12 = vunpack.c.h.bf16 %v3525_v43 }
  0xb8   :  { %v3530_v58 = vunpack.c.l.bf16 %v3529_v39  ;;  %v3532_v24 = vunpack.c.l.bf16 %v3531_v47  ;;  %v3533_v1 = vunpack.c.h.bf16 %v3529_v39  ;;  %v3534_v35 = vunpack.c.h.bf16 %v3531_v47 }
  0xb9   :  { %v679_v38 = vadd.f32 %v3526_v10, %v3524_v25  ;;  %v686_v26 = vadd.f32 %v3528_v12, %v3527_v2  ;;  %v3536_v8 = vunpack.c.l.bf16 %v3535_v23  ;;  %v3538_v52 = vunpack.c.l.bf16 %v3537_v21 }
  0xba   :  { %v693_v59 = vadd.f32 %v3532_v24, %v3530_v58  ;;  %v700_v60 = vadd.f32 %v3534_v35, %v3533_v1  ;;  %v3539_v55 = vunpack.c.h.bf16 %v3535_v23  ;;  %v3540_v51 = vunpack.c.h.bf16 %v3537_v21  ;;  %v3561_v21 = vld [vmem:[#allocation42_spill] sm:$0xff] }
  0xbb   :  { %v707_v29 = vadd.f32 %v3538_v52, %v3536_v8  ;;  %v2302_v30 = vadd.f32 %v614_v49, %v613_v18  ;;  %v2304_v22 = vadd.f32 %v621_v31, %v620_v0  ;;  %v666_v14 = vrot.slane %v665_v41, 4 }
  0xbc   :  { %v714_v16 = vadd.f32 %v3540_v51, %v3539_v55  ;;  %v673_v25 = vrot.slane %v672_v19, 4  ;;  %v2306_v43 = vadd.f32 %v628_v9, %v627_v40  ;;  %v2308_v10 = vadd.f32 %v635_v3, %v634_v33  ;;  %v3549_v40 = vld [vmem:[#allocation34_spill] sm:$0xff]  ;;  %v3551_v33 = vld [vmem:[#allocation40_spill] sm:$0xff] }
  0xbd   :  { %3541 = vst [vmem:[#allocation30_spill] sm:$0xff] %v2302_v30  ;;  %3542 = vst [vmem:[#allocation36_spill] sm:$0xff] %v2304_v22  ;;  %v2310_v2 = vadd.f32 %v642_v37, %v641_v46  ;;  %v2312_v12 = vadd.f32 %v649_v57, %v648_v61  ;;  %v2314_v39 = vadd.f32 %v656_v34, %v655_v7  ;;  %v680_v47 = vrot.slane %v679_v38, 4  ;;  %v3557_v34 = vld [vmem:[#allocation41_spill] sm:$0xff]  ;;  %v3563_v55 = vld [vmem:[#allocation48_spill] sm:$0xff] }
  0xbe   :  { %3543 = vst [vmem:[#allocation31_spill] sm:$0xff] %v2306_v43  ;;  %3544 = vst [vmem:[#allocation37_spill] sm:$0xff] %v2308_v10  ;;  %v2316_v58 = vadd.f32 %v663_v15, %v662_v32  ;;  %v687_v24 = vrot.slane %v686_v26, 4  ;;  %v694_v18 = vrot.slane %v693_v59, 4  ;;  %v701_v49 = vrot.slane %v700_v60, 4  ;;  %v3555_v32 = vld [vmem:[#allocation35_spill] sm:$0xff] }
  0xbf   :  { %3545 = vst [vmem:[#allocation32_spill] sm:$0xff] %v2310_v2  ;;  %3546 = vst [vmem:[#allocation38_spill] sm:$0xff] %v2312_v12  ;;  %v708_v0 = vrot.slane %v707_v29, 4  ;;  %v715_v31 = vrot.slane %v714_v16, 4  ;;  %v667_v1 = vadd.f32 %v666_v14, %v665_v41  ;;  %v674_v35 = vadd.f32 %v673_v25, %v672_v19 }
  0xc0   :  { %3547 = vst [vmem:[#allocation33_spill] sm:$0xff] %v2314_v39  ;;  %3548 = vst [vmem:[#allocation39_spill] sm:$0xff] %v2316_v58  ;;  %v3550_v9 = vunpack.c.l.bf16 %v3549_v40  ;;  %v3552_v3 = vunpack.c.l.bf16 %v3551_v33  ;;  %v3553_v61 = vunpack.c.h.bf16 %v3549_v40  ;;  %v3554_v7 = vunpack.c.h.bf16 %v3551_v33 }
  0xc1   :  { %v3556_v57 = vunpack.c.l.bf16 %v3555_v32  ;;  %v3558_v15 = vunpack.c.l.bf16 %v3557_v34  ;;  %v3559_v8 = vunpack.c.h.bf16 %v3555_v32  ;;  %v3560_v41 = vunpack.c.h.bf16 %v3557_v34 }
  0xc2   :  { %v721_v46 = vadd.f32 %v3552_v3, %v3550_v9  ;;  %v728_v37 = vadd.f32 %v3554_v7, %v3553_v61  ;;  %v3562_v52 = vunpack.c.l.bf16 %v3561_v21  ;;  %v3564_v51 = vunpack.c.l.bf16 %v3563_v55  ;;  %v3567_v61 = vld [vmem:[#allocation43_spill] sm:$0xff] }
  0xc3   :  { %v735_v23 = vadd.f32 %v3558_v15, %v3556_v57  ;;  %v742_v19 = vadd.f32 %v3560_v41, %v3559_v8  ;;  %v3565_v25 = vunpack.c.h.bf16 %v3561_v21  ;;  %v3566_v40 = vunpack.c.h.bf16 %v3563_v55  ;;  %v3569_v57 = vld [vmem:[#allocation49_spill] sm:$0xff] }
  0xc4   :  { %v749_v14 = vadd.f32 %v3564_v51, %v3562_v52  ;;  %v681_v33 = vadd.f32 %v680_v47, %v679_v38  ;;  %v688_v3 = vadd.f32 %v687_v24, %v686_v26  ;;  %v3568_v7 = vunpack.c.l.bf16 %v3567_v61 }
  0xc5   :  { %v756_v9 = vadd.f32 %v3566_v40, %v3565_v25  ;;  %v3570_v15 = vunpack.c.l.bf16 %v3569_v57  ;;  %v3571_v34 = vunpack.c.h.bf16 %v3567_v61  ;;  %v3572_v8 = vunpack.c.h.bf16 %v3569_v57 }
  0xc6   :  { %v695_v58 = vadd.f32 %v694_v18, %v693_v59  ;;  %v702_v39 = vadd.f32 %v701_v49, %v700_v60  ;;  %v709_v52 = vadd.f32 %v708_v0, %v707_v29  ;;  %v716_v51 = vadd.f32 %v715_v31, %v714_v16 }
  0xc7   :  { %v763_v32 = vadd.f32 %v3570_v15, %v3568_v7  ;;  %v770_v41 = vadd.f32 %v3572_v8, %v3571_v34  ;;  %v668_v21 = vrot.slane %v667_v1, 2  ;;  %v675_v12 = vrot.slane %v674_v35, 2 }
  0xc8   :  { %v722_v55 = vrot.slane %v721_v46, 4  ;;  %v729_v25 = vrot.slane %v728_v37, 4  ;;  %v736_v38 = vrot.slane %v735_v23, 4  ;;  %v743_v26 = vrot.slane %v742_v19, 4 }
  0xc9   :  { %v750_v47 = vrot.slane %v749_v14, 4  ;;  %v757_v24 = vrot.slane %v756_v9, 4  ;;  %v682_v40 = vrot.slane %v681_v33, 2  ;;  %v689_v2 = vrot.slane %v688_v3, 2 }
  0xca   :  { %v764_v7 = vrot.slane %v763_v32, 4  ;;  %v771_v15 = vrot.slane %v770_v41, 4  ;;  %v696_v61 = vrot.slane %v695_v58, 2  ;;  %v703_v10 = vrot.slane %v702_v39, 2 }
  0xcb   :  { %v710_v57 = vrot.slane %v709_v52, 2  ;;  %v717_v34 = vrot.slane %v716_v51, 2  ;;  %v669_v59 = vadd.f32 %v668_v21, %v667_v1  ;;  %v676_v60 = vadd.f32 %v675_v12, %v674_v35 }
  0xcc   :  { %v723_v29 = vadd.f32 %v722_v55, %v721_v46  ;;  %v730_v16 = vadd.f32 %v729_v25, %v728_v37  ;;  %v737_v18 = vadd.f32 %v736_v38, %v735_v23  ;;  %v744_v49 = vadd.f32 %v743_v26, %v742_v19 }
  0xcd   :  { %v751_v0 = vadd.f32 %v750_v47, %v749_v14  ;;  %v758_v31 = vadd.f32 %v757_v24, %v756_v9  ;;  %v683_v8 = vadd.f32 %v682_v40, %v681_v33  ;;  %v690_v43 = vadd.f32 %v689_v2, %v688_v3  ;;  %v3581_v40 = vld [vmem:[#allocation44_spill] sm:$0xff] }
  0xce   :  { %v765_v22 = vadd.f32 %v764_v7, %v763_v32  ;;  %v772_v30 = vadd.f32 %v771_v15, %v770_v41  ;;  %v697_v28 = vadd.f32 %v696_v61, %v695_v58  ;;  %v704_v11 = vadd.f32 %v703_v10, %v702_v39  ;;  %v3583_v15 = vld [vmem:[#allocation50_spill] sm:$0xff] }
  0xcf   :  { %v711_v63 = vadd.f32 %v710_v57, %v709_v52  ;;  %v718_v44 = vadd.f32 %v717_v34, %v716_v51  ;;  %v670_v62 = vrot.slane %v669_v59, 1  ;;  %v677_v17 = vrot.slane %v676_v60, 1 }
  0xd0   :  { %v724_v48 = vrot.slane %v723_v29, 2  ;;  %v731_v45 = vrot.slane %v730_v16, 2  ;;  %v738_v1 = vrot.slane %v737_v18, 2  ;;  %v745_v12 = vrot.slane %v744_v49, 2 }
  0xd1   :  { %v752_v35 = vrot.slane %v751_v0, 2  ;;  %v759_v46 = vrot.slane %v758_v31, 2  ;;  %v684_v37 = vrot.slane %v683_v8, 1  ;;  %v691_v23 = vrot.slane %v690_v43, 1 }
  0xd2   :  { %v766_v19 = vrot.slane %v765_v22, 2  ;;  %v773_v14 = vrot.slane %v772_v30, 2  ;;  %v698_v9 = vrot.slane %v697_v28, 1  ;;  %v705_v2 = vrot.slane %v704_v11, 1 }
  0xd3   :  { %v712_v33 = vrot.slane %v711_v63, 1  ;;  %v719_v3 = vrot.slane %v718_v44, 1  ;;  %v2350_v58 = vadd.f32 %v670_v62, %v669_v59  ;;  %v2352_v10 = vadd.f32 %v677_v17, %v676_v60 }
  0xd4   :  { %v725_v39 = vadd.f32 %v724_v48, %v723_v29  ;;  %v732_v32 = vadd.f32 %v731_v45, %v730_v16  ;;  %v739_v41 = vadd.f32 %v738_v1, %v737_v18  ;;  %v746_v52 = vadd.f32 %v745_v12, %v744_v49  ;;  %v3589_v16 = vld [vmem:[#allocation51_spill] sm:$0xff]  ;;  %v3593_v1 = vld [vmem:[#allocation46_spill] sm:$0xff] }
  0xd5   :  { %3573 = vst [vmem:[#allocation34_spill] sm:$0xff] %v2350_v58  ;;  %3574 = vst [vmem:[#allocation40_spill] sm:$0xff] %v2352_v10  ;;  %v753_v51 = vadd.f32 %v752_v35, %v751_v0  ;;  %v760_v21 = vadd.f32 %v759_v46, %v758_v31  ;;  %v2354_v55 = vadd.f32 %v684_v37, %v683_v8  ;;  %v3582_v7 = vunpack.c.l.bf16 %v3581_v40  ;;  %v3595_v35 = vld [vmem:[#allocation52_spill] sm:$0xff] }
  0xd6   :  { %v2356_v25 = vadd.f32 %v691_v23, %v690_v43  ;;  %v767_v38 = vadd.f32 %v766_v19, %v765_v22  ;;  %v774_v26 = vadd.f32 %v773_v14, %v772_v30  ;;  %v2358_v47 = vadd.f32 %v698_v9, %v697_v28  ;;  %v3599_v9 = vld [vmem:[#allocation47_spill] sm:$0xff] }
  0xd7   :  { %3575 = vst [vmem:[#allocation35_spill] sm:$0xff] %v2354_v55  ;;  %v2360_v24 = vadd.f32 %v705_v2, %v704_v11  ;;  %v2362_v62 = vadd.f32 %v712_v33, %v711_v63  ;;  %v2364_v17 = vadd.f32 %v719_v3, %v718_v44  ;;  %v726_v48 = vrot.slane %v725_v39, 1  ;;  %v3587_v44 = vld [vmem:[#allocation45_spill] sm:$0xff] }
  0xd8   :  { %3576 = vst [vmem:[#allocation41_spill] sm:$0xff] %v2356_v25  ;;  %3577 = vst [vmem:[#allocation42_spill] sm:$0xff] %v2358_v47  ;;  %v733_v45 = vrot.slane %v732_v32, 1  ;;  %v3584_v61 = vunpack.c.l.bf16 %v3583_v15  ;;  %v3585_v43 = vunpack.c.h.bf16 %v3581_v40  ;;  %v3586_v22 = vunpack.c.h.bf16 %v3583_v15  ;;  %v3601_v33 = vld [vmem:[#allocation53_spill] sm:$0xff] }
  0xd9   :  { %3578 = vst [vmem:[#allocation48_spill] sm:$0xff] %v2360_v24  ;;  %3579 = vst [vmem:[#allocation43_spill] sm:$0xff] %v2362_v62  ;;  %v740_v28 = vrot.slane %v739_v41, 1  ;;  %v747_v34 = vrot.slane %v746_v52, 1  ;;  %v754_v11 = vrot.slane %v753_v51, 1  ;;  %v761_v59 = vrot.slane %v760_v21, 1 }
  0xda   :  { %3580 = vst [vmem:[#allocation49_spill] sm:$0xff] %v2364_v17  ;;  %v777_v57 = vadd.f32 %v3584_v61, %v3582_v7  ;;  %v784_v30 = vadd.f32 %v3586_v22, %v3585_v43  ;;  %v768_v63 = vrot.slane %v767_v38, 1  ;;  %v775_v60 = vrot.slane %v774_v26, 1 }
  0xdb   :  { %v3588_v29 = vunpack.c.l.bf16 %v3587_v44  ;;  %v3590_v18 = vunpack.c.l.bf16 %v3589_v16  ;;  %v3591_v0 = vunpack.c.h.bf16 %v3587_v44  ;;  %v3592_v31 = vunpack.c.h.bf16 %v3589_v16 }
  0xdc   :  { %v3594_v12 = vunpack.c.l.bf16 %v3593_v1  ;;  %v3596_v46 = vunpack.c.l.bf16 %v3595_v35  ;;  %v3597_v23 = vunpack.c.h.bf16 %v3593_v1  ;;  %v3598_v19 = vunpack.c.h.bf16 %v3595_v35 }
  0xdd   :  { %v791_v49 = vadd.f32 %v3590_v18, %v3588_v29  ;;  %v798_v8 = vadd.f32 %v3592_v31, %v3591_v0  ;;  %v3600_v2 = vunpack.c.l.bf16 %v3599_v9  ;;  %v3602_v3 = vunpack.c.l.bf16 %v3601_v33 }
  0xde   :  { %v805_v37 = vadd.f32 %v3596_v46, %v3594_v12  ;;  %v812_v14 = vadd.f32 %v3598_v19, %v3597_v23  ;;  %v3603_v7 = vunpack.c.h.bf16 %v3599_v9  ;;  %v3604_v15 = vunpack.c.h.bf16 %v3601_v33  ;;  %v3625_v33 = vld [vmem:[#allocation56_spill] sm:$0xff] }
  0xdf   :  { %v819_v40 = vadd.f32 %v3602_v3, %v3600_v2  ;;  %v2398_v43 = vadd.f32 %v726_v48, %v725_v39  ;;  %v2400_v22 = vadd.f32 %v733_v45, %v732_v32  ;;  %v778_v44 = vrot.slane %v777_v57, 4 }
  0xe0   :  { %v826_v61 = vadd.f32 %v3604_v15, %v3603_v7  ;;  %v785_v29 = vrot.slane %v784_v30, 4  ;;  %v2402_v16 = vadd.f32 %v740_v28, %v739_v41  ;;  %v2404_v18 = vadd.f32 %v747_v34, %v746_v52  ;;  %v3613_v41 = vld [vmem:[#allocation54_spill] sm:$0xff]  ;;  %v3615_v52 = vld [vmem:[#allocation60_spill] sm:$0xff] }
  0xe1   :  { %3605 = vst [vmem:[#allocation44_spill] sm:$0xff] %v2398_v43  ;;  %3606 = vst [vmem:[#allocation50_spill] sm:$0xff] %v2400_v22  ;;  %v2406_v0 = vadd.f32 %v754_v11, %v753_v51  ;;  %v2408_v31 = vadd.f32 %v761_v59, %v760_v21  ;;  %v2410_v1 = vadd.f32 %v768_v63, %v767_v38  ;;  %v792_v35 = vrot.slane %v791_v49, 4  ;;  %v3621_v63 = vld [vmem:[#allocation61_spill] sm:$0xff]  ;;  %v3627_v7 = vld [vmem:[#allocation62_spill] sm:$0xff] }
  0xe2   :  { %3607 = vst [vmem:[#allocation45_spill] sm:$0xff] %v2402_v16  ;;  %3608 = vst [vmem:[#allocation51_spill] sm:$0xff] %v2404_v18  ;;  %v2412_v12 = vadd.f32 %v775_v60, %v774_v26  ;;  %v799_v46 = vrot.slane %v798_v8, 4  ;;  %v806_v39 = vrot.slane %v805_v37, 4  ;;  %v813_v48 = vrot.slane %v812_v14, 4  ;;  %v3619_v26 = vld [vmem:[#allocation55_spill] sm:$0xff] }
  0xe3   :  { %3609 = vst [vmem:[#allocation46_spill] sm:$0xff] %v2406_v0  ;;  %3610 = vst [vmem:[#allocation52_spill] sm:$0xff] %v2408_v31  ;;  %v820_v32 = vrot.slane %v819_v40, 4  ;;  %v827_v45 = vrot.slane %v826_v61, 4  ;;  %v779_v23 = vadd.f32 %v778_v44, %v777_v57  ;;  %v786_v19 = vadd.f32 %v785_v29, %v784_v30 }
  0xe4   :  { %3611 = vst [vmem:[#allocation47_spill] sm:$0xff] %v2410_v1  ;;  %3612 = vst [vmem:[#allocation53_spill] sm:$0xff] %v2412_v12  ;;  %v3614_v28 = vunpack.c.l.bf16 %v3613_v41  ;;  %v3616_v34 = vunpack.c.l.bf16 %v3615_v52  ;;  %v3617_v21 = vunpack.c.h.bf16 %v3613_v41  ;;  %v3618_v38 = vunpack.c.h.bf16 %v3615_v52 }
  0xe5   :  { %v3620_v59 = vunpack.c.l.bf16 %v3619_v26  ;;  %v3622_v60 = vunpack.c.l.bf16 %v3621_v63  ;;  %v3623_v2 = vunpack.c.h.bf16 %v3619_v26  ;;  %v3624_v57 = vunpack.c.h.bf16 %v3621_v63 }
  0xe6   :  { %v833_v51 = vadd.f32 %v3616_v34, %v3614_v28  ;;  %v840_v11 = vadd.f32 %v3618_v38, %v3617_v21  ;;  %v3626_v3 = vunpack.c.l.bf16 %v3625_v33  ;;  %v3628_v15 = vunpack.c.l.bf16 %v3627_v7  ;;  %v3631_v21 = vld [vmem:[#allocation57_spill] sm:$0xff] }
  0xe7   :  { %v847_v9 = vadd.f32 %v3622_v60, %v3620_v59  ;;  %v854_v30 = vadd.f32 %v3624_v57, %v3623_v2  ;;  %v3629_v29 = vunpack.c.h.bf16 %v3625_v33  ;;  %v3630_v41 = vunpack.c.h.bf16 %v3627_v7  ;;  %v3633_v59 = vld [vmem:[#allocation63_spill] sm:$0xff] }
  0xe8   :  { %v861_v44 = vadd.f32 %v3628_v15, %v3626_v3  ;;  %v793_v52 = vadd.f32 %v792_v35, %v791_v49  ;;  %v800_v34 = vadd.f32 %v799_v46, %v798_v8  ;;  %v3632_v38 = vunpack.c.l.bf16 %v3631_v21 }
  0xe9   :  { %v868_v28 = vadd.f32 %v3630_v41, %v3629_v29  ;;  %v3634_v60 = vunpack.c.l.bf16 %v3633_v59  ;;  %v3635_v63 = vunpack.c.h.bf16 %v3631_v21  ;;  %v3636_v2 = vunpack.c.h.bf16 %v3633_v59 }
  0xea   :  { %v807_v12 = vadd.f32 %v806_v39, %v805_v37  ;;  %v814_v1 = vadd.f32 %v813_v48, %v812_v14  ;;  %v821_v3 = vadd.f32 %v820_v32, %v819_v40  ;;  %v828_v15 = vadd.f32 %v827_v45, %v826_v61 }
  0xeb   :  { %v875_v26 = vadd.f32 %v3634_v60, %v3632_v38  ;;  %v882_v57 = vadd.f32 %v3636_v2, %v3635_v63  ;;  %v780_v33 = vrot.slane %v779_v23, 2  ;;  %v787_v31 = vrot.slane %v786_v19, 2 }
  0xec   :  { %v834_v7 = vrot.slane %v833_v51, 4  ;;  %v841_v29 = vrot.slane %v840_v11, 4  ;;  %v848_v49 = vrot.slane %v847_v9, 4  ;;  %v855_v8 = vrot.slane %v854_v30, 4 }
  0xed   :  { %v862_v35 = vrot.slane %v861_v44, 4  ;;  %v869_v46 = vrot.slane %v868_v28, 4  ;;  %v794_v41 = vrot.slane %v793_v52, 2  ;;  %v801_v0 = vrot.slane %v800_v34, 2 }
  0xee   :  { %v876_v38 = vrot.slane %v875_v26, 4  ;;  %v883_v60 = vrot.slane %v882_v57, 4  ;;  %v808_v21 = vrot.slane %v807_v12, 2  ;;  %v815_v18 = vrot.slane %v814_v1, 2 }
  0xef   :  { %v822_v59 = vrot.slane %v821_v3, 2  ;;  %v829_v63 = vrot.slane %v828_v15, 2  ;;  %v781_v37 = vadd.f32 %v780_v33, %v779_v23  ;;  %v788_v14 = vadd.f32 %v787_v31, %v786_v19 }
  0xf0   :  { %v835_v40 = vadd.f32 %v834_v7, %v833_v51  ;;  %v842_v61 = vadd.f32 %v841_v29, %v840_v11  ;;  %v849_v39 = vadd.f32 %v848_v49, %v847_v9  ;;  %v856_v48 = vadd.f32 %v855_v8, %v854_v30 }
  0xf1   :  { %v863_v32 = vadd.f32 %v862_v35, %v861_v44  ;;  %v870_v45 = vadd.f32 %v869_v46, %v868_v28  ;;  %v795_v2 = vadd.f32 %v794_v41, %v793_v52  ;;  %v802_v16 = vadd.f32 %v801_v0, %v800_v34  ;;  %v3645_v41 = vld [vmem:[#allocation58_spill] sm:$0xff] }
  0xf2   :  { %v877_v22 = vadd.f32 %v876_v38, %v875_v26  ;;  %v884_v43 = vadd.f32 %v883_v60, %v882_v57  ;;  %v809_v17 = vadd.f32 %v808_v21, %v807_v12  ;;  %v816_v62 = vadd.f32 %v815_v18, %v814_v1  ;;  %v3647_v60 = vld [vmem:[#allocation64_spill] sm:$0xff] }
  0xf3   :  { %v823_v24 = vadd.f32 %v822_v59, %v821_v3  ;;  %v830_v47 = vadd.f32 %v829_v63, %v828_v15  ;;  %v782_v25 = vrot.slane %v781_v37, 1  ;;  %v789_v55 = vrot.slane %v788_v14, 1 }
  0xf4   :  { %v836_v10 = vrot.slane %v835_v40, 2  ;;  %v843_v58 = vrot.slane %v842_v61, 2  ;;  %v850_v23 = vrot.slane %v849_v39, 2  ;;  %v857_v31 = vrot.slane %v856_v48, 2 }
  0xf5   :  { %v864_v19 = vrot.slane %v863_v32, 2  ;;  %v871_v51 = vrot.slane %v870_v45, 2  ;;  %v796_v11 = vrot.slane %v795_v2, 1  ;;  %v803_v9 = vrot.slane %v802_v16, 1 }
  0xf6   :  { %v878_v30 = vrot.slane %v877_v22, 2  ;;  %v885_v44 = vrot.slane %v884_v43, 2  ;;  %v810_v28 = vrot.slane %v809_v17, 1  ;;  %v817_v0 = vrot.slane %v816_v62, 1 }
  0xf7   :  { %v824_v52 = vrot.slane %v823_v24, 1  ;;  %v831_v34 = vrot.slane %v830_v47, 1  ;;  %v2446_v12 = vadd.f32 %v782_v25, %v781_v37  ;;  %v2448_v18 = vadd.f32 %v789_v55, %v788_v14 }
  0xf8   :  { %v837_v1 = vadd.f32 %v836_v10, %v835_v40  ;;  %v844_v26 = vadd.f32 %v843_v58, %v842_v61  ;;  %v851_v57 = vadd.f32 %v850_v23, %v849_v39  ;;  %v858_v3 = vadd.f32 %v857_v31, %v856_v48  ;;  %v3653_v61 = vld [vmem:[#allocation65_spill] sm:$0xff]  ;;  %v3657_v23 = vld [vmem:[#allocation66_spill] sm:$0xff] }
  0xf9   :  { %3637 = vst [vmem:[#allocation54_spill] sm:$0xff] %v2446_v12  ;;  %3638 = vst [vmem:[#allocation60_spill] sm:$0xff] %v2448_v18  ;;  %v865_v15 = vadd.f32 %v864_v19, %v863_v32  ;;  %v872_v33 = vadd.f32 %v871_v51, %v870_v45  ;;  %v2450_v7 = vadd.f32 %v796_v11, %v795_v2  ;;  %v3646_v38 = vunpack.c.l.bf16 %v3645_v41  ;;  %v3659_v19 = vld [vmem:[#allocation72_spill] sm:$0xff] }
  0xfa   :  { %v2452_v29 = vadd.f32 %v803_v9, %v802_v16  ;;  %v879_v49 = vadd.f32 %v878_v30, %v877_v22  ;;  %v886_v8 = vadd.f32 %v885_v44, %v884_v43  ;;  %v2454_v35 = vadd.f32 %v810_v28, %v809_v17  ;;  %v3663_v28 = vld [vmem:[#allocation67_spill] sm:$0xff] }
  0xfb   :  { %3639 = vst [vmem:[#allocation55_spill] sm:$0xff] %v2450_v7  ;;  %v2456_v46 = vadd.f32 %v817_v0, %v816_v62  ;;  %v2458_v25 = vadd.f32 %v824_v52, %v823_v24  ;;  %v2460_v55 = vadd.f32 %v831_v34, %v830_v47  ;;  %v838_v10 = vrot.slane %v837_v1, 1  ;;  %v3651_v47 = vld [vmem:[#allocation59_spill] sm:$0xff]  ;;  %v3665_v52 = vld [vmem:[#allocation73_spill] sm:$0xff] }
  0xfc   :  { %3640 = vst [vmem:[#allocation61_spill] sm:$0xff] %v2452_v29  ;;  %3641 = vst [vmem:[#allocation56_spill] sm:$0xff] %v2454_v35  ;;  %v845_v58 = vrot.slane %v844_v26, 1  ;;  %v3648_v21 = vunpack.c.l.bf16 %v3647_v60  ;;  %v3649_v16 = vunpack.c.h.bf16 %v3645_v41  ;;  %v3650_v22 = vunpack.c.h.bf16 %v3647_v60 }
  0xfd   :  { %3642 = vst [vmem:[#allocation62_spill] sm:$0xff] %v2456_v46  ;;  %3643 = vst [vmem:[#allocation57_spill] sm:$0xff] %v2458_v25  ;;  %v852_v17 = vrot.slane %v851_v57, 1  ;;  %v859_v63 = vrot.slane %v858_v3, 1  ;;  %v866_v62 = vrot.slane %v865_v15, 1  ;;  %v873_v37 = vrot.slane %v872_v33, 1 }
  0xfe   :  { %3644 = vst [vmem:[#allocation63_spill] sm:$0xff] %v2460_v55  ;;  %v889_v59 = vadd.f32 %v3648_v21, %v3646_v38  ;;  %v896_v43 = vadd.f32 %v3650_v22, %v3649_v16  ;;  %v880_v24 = vrot.slane %v879_v49, 1  ;;  %v887_v14 = vrot.slane %v886_v8, 1 }
  0xff   :  { %v3652_v40 = vunpack.c.l.bf16 %v3651_v47  ;;  %v3654_v39 = vunpack.c.l.bf16 %v3653_v61  ;;  %v3655_v32 = vunpack.c.h.bf16 %v3651_v47  ;;  %v3656_v45 = vunpack.c.h.bf16 %v3653_v61 }
 0x100   :  { %v3658_v31 = vunpack.c.l.bf16 %v3657_v23  ;;  %v3660_v51 = vunpack.c.l.bf16 %v3659_v19  ;;  %v3661_v9 = vunpack.c.h.bf16 %v3657_v23  ;;  %v3662_v30 = vunpack.c.h.bf16 %v3659_v19 }
 0x101   :  { %v903_v48 = vadd.f32 %v3654_v39, %v3652_v40  ;;  %v910_v2 = vadd.f32 %v3656_v45, %v3655_v32  ;;  %v3664_v0 = vunpack.c.l.bf16 %v3663_v28  ;;  %v3666_v34 = vunpack.c.l.bf16 %v3665_v52 }
 0x102   :  { %v917_v11 = vadd.f32 %v3660_v51, %v3658_v31  ;;  %v924_v44 = vadd.f32 %v3662_v30, %v3661_v9  ;;  %v3667_v38 = vunpack.c.h.bf16 %v3663_v28  ;;  %v3668_v60 = vunpack.c.h.bf16 %v3665_v52  ;;  %v3689_v52 = vld [vmem:[#allocation70_spill] sm:$0xff] }
 0x103   :  { %v931_v41 = vadd.f32 %v3666_v34, %v3664_v0  ;;  %v2494_v16 = vadd.f32 %v838_v10, %v837_v1  ;;  %v2496_v22 = vadd.f32 %v845_v58, %v844_v26  ;;  %v890_v47 = vrot.slane %v889_v59, 4 }
 0x104   :  { %v938_v21 = vadd.f32 %v3668_v60, %v3667_v38  ;;  %v897_v40 = vrot.slane %v896_v43, 4  ;;  %v2498_v61 = vadd.f32 %v852_v17, %v851_v57  ;;  %v2500_v39 = vadd.f32 %v859_v63, %v858_v3  ;;  %v3677_v57 = vld [vmem:[#allocation68_spill] sm:$0xff]  ;;  %v3679_v3 = vld [vmem:[#allocation74_spill] sm:$0xff] }
 0x105   :  { %3669 = vst [vmem:[#allocation58_spill] sm:$0xff] %v2494_v16  ;;  %3670 = vst [vmem:[#allocation64_spill] sm:$0xff] %v2496_v22  ;;  %v2502_v32 = vadd.f32 %v866_v62, %v865_v15  ;;  %v2504_v45 = vadd.f32 %v873_v37, %v872_v33  ;;  %v2506_v23 = vadd.f32 %v880_v24, %v879_v49  ;;  %v904_v19 = vrot.slane %v903_v48, 4  ;;  %v3685_v24 = vld [vmem:[#allocation75_spill] sm:$0xff]  ;;  %v3691_v38 = vld [vmem:[#allocation76_spill] sm:$0xff] }
 0x106   :  { %3671 = vst [vmem:[#allocation59_spill] sm:$0xff] %v2498_v61  ;;  %3672 = vst [vmem:[#allocation65_spill] sm:$0xff] %v2500_v39  ;;  %v2508_v31 = vadd.f32 %v887_v14, %v886_v8  ;;  %v911_v51 = vrot.slane %v910_v2, 4  ;;  %v918_v1 = vrot.slane %v917_v11, 4  ;;  %v925_v10 = vrot.slane %v924_v44, 4  ;;  %v3683_v8 = vld [vmem:[#allocation69_spill] sm:$0xff] }
 0x107   :  { %3673 = vst [vmem:[#allocation66_spill] sm:$0xff] %v2502_v32  ;;  %3674 = vst [vmem:[#allocation72_spill] sm:$0xff] %v2504_v45  ;;  %v932_v26 = vrot.slane %v931_v41, 4  ;;  %v939_v58 = vrot.slane %v938_v21, 4  ;;  %v891_v9 = vadd.f32 %v890_v47, %v889_v59  ;;  %v898_v30 = vadd.f32 %v897_v40, %v896_v43 }
 0x108   :  { %3675 = vst [vmem:[#allocation67_spill] sm:$0xff] %v2506_v23  ;;  %3676 = vst [vmem:[#allocation73_spill] sm:$0xff] %v2508_v31  ;;  %v3678_v17 = vunpack.c.l.bf16 %v3677_v57  ;;  %v3680_v63 = vunpack.c.l.bf16 %v3679_v3  ;;  %v3681_v33 = vunpack.c.h.bf16 %v3677_v57  ;;  %v3682_v49 = vunpack.c.h.bf16 %v3679_v3 }
 0x109   :  { %v3684_v37 = vunpack.c.l.bf16 %v3683_v8  ;;  %v3686_v14 = vunpack.c.l.bf16 %v3685_v24  ;;  %v3687_v0 = vunpack.c.h.bf16 %v3683_v8  ;;  %v3688_v59 = vunpack.c.h.bf16 %v3685_v24 }
 0x10a   :  { %v945_v15 = vadd.f32 %v3680_v63, %v3678_v17  ;;  %v952_v62 = vadd.f32 %v3682_v49, %v3681_v33  ;;  %v3690_v34 = vunpack.c.l.bf16 %v3689_v52  ;;  %v3692_v60 = vunpack.c.l.bf16 %v3691_v38  ;;  %v3695_v33 = vld [vmem:[#allocation71_spill] sm:$0xff] }
 0x10b   :  { %v959_v28 = vadd.f32 %v3686_v14, %v3684_v37  ;;  %v966_v43 = vadd.f32 %v3688_v59, %v3687_v0  ;;  %v3693_v40 = vunpack.c.h.bf16 %v3689_v52  ;;  %v3694_v57 = vunpack.c.h.bf16 %v3691_v38  ;;  %v3697_v37 = vld [vmem:[#allocation77_spill] sm:$0xff] }
 0x10c   :  { %v973_v47 = vadd.f32 %v3692_v60, %v3690_v34  ;;  %v905_v3 = vadd.f32 %v904_v19, %v903_v48  ;;  %v912_v63 = vadd.f32 %v911_v51, %v910_v2  ;;  %v3696_v49 = vunpack.c.l.bf16 %v3695_v33 }
 0x10d   :  { %v980_v17 = vadd.f32 %v3694_v57, %v3693_v40  ;;  %v3698_v14 = vunpack.c.l.bf16 %v3697_v37  ;;  %v3699_v24 = vunpack.c.h.bf16 %v3695_v33  ;;  %v3700_v0 = vunpack.c.h.bf16 %v3697_v37 }
 0x10e   :  { %v919_v31 = vadd.f32 %v918_v1, %v917_v11  ;;  %v926_v23 = vadd.f32 %v925_v10, %v924_v44  ;;  %v933_v34 = vadd.f32 %v932_v26, %v931_v41  ;;  %v940_v60 = vadd.f32 %v939_v58, %v938_v21 }
 0x10f   :  { %v987_v8 = vadd.f32 %v3698_v14, %v3696_v49  ;;  %v994_v59 = vadd.f32 %v3700_v0, %v3699_v24  ;;  %v892_v52 = vrot.slane %v891_v9, 2  ;;  %v899_v45 = vrot.slane %v898_v30, 2 }
 0x110   :  { %v946_v38 = vrot.slane %v945_v15, 4  ;;  %v953_v40 = vrot.slane %v952_v62, 4  ;;  %v960_v48 = vrot.slane %v959_v28, 4  ;;  %v967_v2 = vrot.slane %v966_v43, 4 }
 0x111   :  { %v974_v19 = vrot.slane %v973_v47, 4  ;;  %v981_v51 = vrot.slane %v980_v17, 4  ;;  %v906_v57 = vrot.slane %v905_v3, 2  ;;  %v913_v32 = vrot.slane %v912_v63, 2 }
 0x112   :  { %v988_v49 = vrot.slane %v987_v8, 4  ;;  %v995_v14 = vrot.slane %v994_v59, 4  ;;  %v920_v33 = vrot.slane %v919_v31, 2  ;;  %v927_v39 = vrot.slane %v926_v23, 2 }
 0x113   :  { %v934_v37 = vrot.slane %v933_v34, 2  ;;  %v941_v24 = vrot.slane %v940_v60, 2  ;;  %v893_v11 = vadd.f32 %v892_v52, %v891_v9  ;;  %v900_v44 = vadd.f32 %v899_v45, %v898_v30 }
 0x114   :  { %v947_v41 = vadd.f32 %v946_v38, %v945_v15  ;;  %v954_v21 = vadd.f32 %v953_v40, %v952_v62  ;;  %v961_v1 = vadd.f32 %v960_v48, %v959_v28  ;;  %v968_v10 = vadd.f32 %v967_v2, %v966_v43 }
 0x115   :  { %v975_v26 = vadd.f32 %v974_v19, %v973_v47  ;;  %v982_v58 = vadd.f32 %v981_v51, %v980_v17  ;;  %v907_v0 = vadd.f32 %v906_v57, %v905_v3  ;;  %v914_v61 = vadd.f32 %v913_v32, %v912_v63 }
 0x116   :  { %v989_v22 = vadd.f32 %v988_v49, %v987_v8  ;;  %v996_v16 = vadd.f32 %v995_v14, %v994_v59  ;;  %v921_v55 = vadd.f32 %v920_v33, %v919_v31  ;;  %v928_v25 = vadd.f32 %v927_v39, %v926_v23 }
 0x117   :  { %v935_v46 = vadd.f32 %v934_v37, %v933_v34  ;;  %v942_v35 = vadd.f32 %v941_v24, %v940_v60  ;;  %v894_v29 = vrot.slane %v893_v11, 1  ;;  %v901_v7 = vrot.slane %v900_v44, 1 }
 0x118   :  { %v948_v18 = vrot.slane %v947_v41, 2  ;;  %v955_v12 = vrot.slane %v954_v21, 2  ;;  %v962_v9 = vrot.slane %v961_v1, 2  ;;  %v969_v45 = vrot.slane %v968_v10, 2 }
 0x119   :  { %v976_v30 = vrot.slane %v975_v26, 2  ;;  %v983_v15 = vrot.slane %v982_v58, 2  ;;  %v908_v62 = vrot.slane %v907_v0, 1  ;;  %v990_v28 = vrot.slane %v989_v22, 2 }
 0x11a   :  { %v997_v43 = vrot.slane %v996_v16, 2  ;;  %v1005_v47 = vlaneseq  ;;  %v915_v17 = vrot.slane %v914_v61, 1  ;;  %v922_v32 = vrot.slane %v921_v55, 1 }
 0x11b   :  { %v929_v3 = vrot.slane %v928_v25, 1  ;;  %v936_v63 = vrot.slane %v935_v46, 1  ;;  %v2542_v31 = vadd.f32 %v894_v29, %v893_v11  ;;  %v943_v39 = vrot.slane %v942_v35, 1 }
 0x11c   :  { %v949_v23 = vadd.f32 %v948_v18, %v947_v41  ;;  %v956_v8 = vadd.f32 %v955_v12, %v954_v21  ;;  %v963_v59 = vadd.f32 %v962_v9, %v961_v1  ;;  %v970_v34 = vadd.f32 %v969_v45, %v968_v10  ;;  %v1002_v45 = vld [vmem:[#allocation5 + $0x8] sm:$0xf] }
 0x11d   :  { %v977_v60 = vadd.f32 %v976_v30, %v975_v26  ;;  %v984_v52 = vadd.f32 %v983_v15, %v982_v58  ;;  %v2544_v38 = vadd.f32 %v901_v7, %v900_v44  ;;  %v991_v40 = vadd.f32 %v990_v28, %v989_v22 }
 0x11e   :  { %v998_v48 = vadd.f32 %v997_v43, %v996_v16  ;;  %v1006_v2 = vshrl.u32 %v1005_v47, 7  ;;  %v2546_v19 = vadd.f32 %v908_v62, %v907_v0  ;;  %v2548_v51 = vadd.f32 %v915_v17, %v914_v61  ;;  %v1001_v61 = vld [vmem:[#allocation5] sm:$0xff] }
 0x11f   :  { %v2550_v57 = vadd.f32 %v922_v32, %v921_v55  ;;  %v2552_v29 = vadd.f32 %v929_v3, %v928_v25  ;;  %v2554_v49 = vadd.f32 %v936_v63, %v935_v46  ;;  %v2556_v12 = vadd.f32 %v943_v39, %v942_v35 }
 0x120   :  { %v950_v18 = vrot.slane %v949_v23, 1  ;;  %v957_v14 = vrot.slane %v956_v8, 1  ;;  %v964_v33 = vrot.slane %v963_v59, 1  ;;  %v971_v7 = vrot.slane %v970_v34, 1 }
 0x121   :  { %v978_v37 = vrot.slane %v977_v60, 1  ;;  %v985_v22 = vrot.slane %v984_v52, 1  ;;  %v992_v16 = vrot.slane %v991_v40, 1  ;;  %v999_v24 = vrot.slane %v998_v48, 1 }
 0x122   :  { %v1007_v11 = vsub.s32 0, %v1006_v2  ;;  %v1011_v44 = vsub.s32 1, %v1006_v2  ;;  %v1015_v41 = vsub.s32 2, %v1006_v2  ;;  %v1019_v55 = vsub.s32 3, %v1006_v2 }
 0x123   :  { %v1023_v21 = vsub.s32 4, %v1006_v2  ;;  %v1027_v25 = vsub.s32 5, %v1006_v2  ;;  %v2558_v1 = vadd.f32 %v950_v18, %v949_v23  ;;  %v2560_v46 = vadd.f32 %v957_v14, %v956_v8  ;;  %v3710_v18 = vld [vmem:[#allocation79_spill] sm:$0xff]  ;;  %v3711_v14 = vld [vmem:[#allocation80_spill] sm:$0xff] }
 0x124   :  { %v1031_v35 = vsub.s32 6, %v1006_v2  ;;  %v1035_v10 = vsub.s32 7, %v1006_v2  ;;  %v2562_v26 = vadd.f32 %v964_v33, %v963_v59  ;;  %v2564_v58 = vadd.f32 %v971_v7, %v970_v34  ;;  %v3709_v2 = vld [vmem:[#allocation78_spill] sm:$0xff]  ;;  %v3712_v33 = vld [vmem:[#allocation81_spill] sm:$0xff] }
 0x125   :  { %v2566_v0 = vadd.f32 %v978_v37, %v977_v60  ;;  %v2568_v9 = vadd.f32 %v985_v22, %v984_v52  ;;  %v2570_v30 = vadd.f32 %v992_v16, %v991_v40  ;;  %v2572_v15 = vadd.f32 %v999_v24, %v998_v48  ;;  %v3713_v7 = vld [vmem:[#allocation10_spill] sm:$0xff]  ;;  %v3715_v16 = vld [vmem:[#allocation11_spill] sm:$0xff] }
 0x126   :  { %v2574_v62 = vrot.slane %v1001_v61, %v1007_v11  ;;  %v2576_v28 = vrot.slane %v1001_v61, %v1011_v44  ;;  %v2578_v43 = vrot.slane %v1001_v61, %v1015_v41  ;;  %v2580_v47 = vrot.slane %v1001_v61, %v1019_v55  ;;  %v3714_v37 = vld [vmem:[#allocation14_spill] sm:$0xff] }
 0x127   :  { %3701 = vst [vmem:[#allocation68_spill] sm:$0xff] %v2572_v15  ;;  %v2582_v17 = vrot.slane %v1001_v61, %v1023_v21  ;;  %v2584_v32 = vrot.slane %v1001_v61, %v1027_v25  ;;  %v2586_v3 = vrot.slane %v1001_v61, %v1031_v35  ;;  %v2588_v63 = vrot.slane %v1001_v61, %v1035_v10  ;;  %v3719_v61 = vld [vmem:[#allocation82_spill] sm:$0xff]  ;;  %v3723_v25 = vld [vmem:[#allocation84_spill] sm:$0xff]  ;;  %v3725_v10 = vld [vmem:[#allocation85_spill] sm:$0xff] }
 0x128   :  { %v2590_v39 = vrot.slane %v1002_v45, %v1007_v11  ;;  %v2592_v23 = vrot.slane %v1002_v45, %v1011_v44  ;;  %v2594_v8 = vrot.slane %v1002_v45, %v1015_v41  ;;  %v2596_v59 = vrot.slane %v1002_v45, %v1019_v55  ;;  %v3717_v11 = vld [vmem:[#allocation15_spill] sm:$0xff]  ;;  %v3735_v15 = vld [vmem:[#allocation25_spill] sm:$0xff] }
 0x129   :  { %v2600_v34 = vmul.f32 %v2574_v62, %v2062_v5  ;;  %v2604_v60 = vmul.f32 %v2576_v28, %v2064_v50  ;;  %v2608_v52 = vmul.f32 %v2578_v43, %v2066_v42  ;;  %v2612_v40 = vmul.f32 %v2580_v47, %v2068_v4  ;;  %v3721_v55 = vld [vmem:[#allocation83_spill] sm:$0xff] }
 0x12a   :  { %v2616_v48 = vmul.f32 %v2582_v17, %v2070_v13  ;;  %v2620_v5 = vmul.f32 %v2584_v32, %v2072_v6  ;;  %v2624_v50 = vmul.f32 %v2586_v3, %v2074_v53  ;;  %v2628_v42 = vmul.f32 %v2588_v63, %v2076_v56 }
 0x12b   :  { %v2632_v4 = vmul.f32 %v2590_v39, %v2110_v27  ;;  %v2636_v13 = vmul.f32 %v2592_v23, %v2112_v20  ;;  %v2640_v6 = vmul.f32 %v2594_v8, %v2114_v36  ;;  %v2644_v53 = vmul.f32 %v2596_v59, %v2116_v54 }
 0x12c   :  { %3702 = vst [vmem:[#allocation74_spill] sm:$0xff] %v2620_v5  ;;  %3703 = vst [vmem:[#allocation69_spill] sm:$0xff] %v2624_v50  ;;  %v2648_v56 = vmul.f32 %v2574_v62, %v3709_v2  ;;  %v2652_v27 = vmul.f32 %v2576_v28, %v3710_v18  ;;  %v2656_v20 = vmul.f32 %v2578_v43, %v3711_v14  ;;  %v3727_v2 = vld [vmem:[#allocation12_spill] sm:$0xff]  ;;  %v3762_v50 = vld [vmem:[#allocation39_spill] sm:$0xff] }
 0x12d   :  { %3704 = vst [vmem:[#allocation75_spill] sm:$0xff] %v2628_v42  ;;  %3705 = vst [vmem:[#allocation70_spill] sm:$0xff] %v2632_v4  ;;  %v2660_v36 = vmul.f32 %v2580_v47, %v3712_v33  ;;  %v2664_v54 = vmul.f32 %v2582_v17, %v3713_v7  ;;  %v2668_v22 = vmul.f32 %v2584_v32, %v3714_v37  ;;  %v3728_v14 = vld [vmem:[#allocation16_spill] sm:$0xff]  ;;  %v3729_v7 = vld [vmem:[#allocation13_spill] sm:$0xff] }
 0x12e   :  { %3706 = vst [vmem:[#allocation76_spill] sm:$0xff] %v2636_v13  ;;  %3707 = vst [vmem:[#allocation71_spill] sm:$0xff] %v2640_v6  ;;  %v2672_v24 = vmul.f32 %v2586_v3, %v3715_v16  ;;  %v2676_v44 = vmul.f32 %v2588_v63, %v3717_v11  ;;  %v2680_v41 = vmul.f32 %v2590_v39, %v3719_v61  ;;  %v3730_v16 = vld [vmem:[#allocation17_spill] sm:$0xff]  ;;  %v3731_v61 = vld [vmem:[#allocation18_spill] sm:$0xff] }
 0x12f   :  { %3708 = vst [vmem:[#allocation77_spill] sm:$0xff] %v2644_v53  ;;  %v2684_v21 = vmul.f32 %v2592_v23, %v3721_v55  ;;  %v2688_v35 = vmul.f32 %v2594_v8, %v3723_v25  ;;  %v2692_v45 = vmul.f32 %v2596_v59, %v3725_v10  ;;  %v2696_v18 = vmul.f32 %v2574_v62, %v3727_v2  ;;  %v3732_v25 = vld [vmem:[#allocation24_spill] sm:$0xff]  ;;  %v3733_v2 = vld [vmem:[#allocation19_spill] sm:$0xff]  ;;  %v3741_v6 = vld [vmem:[#allocation21_spill] sm:$0xff] }
 0x130   :  { %3716 = vst [vmem:[#allocation78_spill] sm:$0xff] %v2672_v24  ;;  %3718 = vst [vmem:[#allocation79_spill] sm:$0xff] %v2676_v44  ;;  %v2700_v33 = vmul.f32 %v2576_v28, %v3728_v14  ;;  %v2704_v37 = vmul.f32 %v2578_v43, %v3729_v7  ;;  %v2708_v11 = vmul.f32 %v2580_v47, %v3730_v16  ;;  %v3737_v53 = vld [vmem:[#allocation20_spill] sm:$0xff]  ;;  %v3743_v13 = vld [vmem:[#allocation27_spill] sm:$0xff] }
 0x131   :  { %3720 = vst [vmem:[#allocation80_spill] sm:$0xff] %v2680_v41  ;;  %3722 = vst [vmem:[#allocation81_spill] sm:$0xff] %v2684_v21  ;;  %v2712_v55 = vmul.f32 %v2582_v17, %v3731_v61  ;;  %v2716_v10 = vmul.f32 %v2584_v32, %v3732_v25  ;;  %v2720_v14 = vmul.f32 %v2586_v3, %v3733_v2  ;;  %v3746_v4 = vld [vmem:[#allocation28_spill] sm:$0xff]  ;;  %v3752_v21 = vld [vmem:[#allocation31_spill] sm:$0xff] }
 0x132   :  { %3724 = vst [vmem:[#allocation10_spill] sm:$0xff] %v2688_v35  ;;  %3726 = vst [vmem:[#allocation14_spill] sm:$0xff] %v2692_v45  ;;  %v2724_v7 = vmul.f32 %v2588_v63, %v3735_v15  ;;  %v2728_v16 = vmul.f32 %v2590_v39, %v3737_v53  ;;  %v3739_v45 = vld [vmem:[#allocation26_spill] sm:$0xff]  ;;  %v2736_v25 = vmul.f32 %v2594_v8, %v3741_v6  ;;  %v3754_v42 = vld [vmem:[#allocation37_spill] sm:$0xff] }
 0x133   :  { %3734 = vst [vmem:[#allocation11_spill] sm:$0xff] %v2720_v14  ;;  %v2732_v61 = vmul.f32 %v2592_v23, %v3739_v45  ;;  %v2740_v2 = vmul.f32 %v2596_v59, %v3743_v13  ;;  %v3745_v35 = vld [vmem:[#allocation22_spill] sm:$0xff]  ;;  %v2748_v53 = vmul.f32 %v2576_v28, %v3746_v4  ;;  %v2768_v4 = vmul.f32 %v2586_v3, %v3752_v21  ;;  %v3760_v44 = vld [vmem:[#allocation33_spill] sm:$0xff]  ;;  %v3774_v14 = vld [vmem:[#allocation43_spill] sm:$0xff] }
 0x134   :  { %3736 = vst [vmem:[#allocation15_spill] sm:$0xff] %v2724_v7  ;;  %3738 = vst [vmem:[#allocation82_spill] sm:$0xff] %v2728_v16  ;;  %v2744_v15 = vmul.f32 %v2574_v62, %v3745_v35  ;;  %v3747_v16 = vld [vmem:[#allocation23_spill] sm:$0xff]  ;;  %v3756_v7 = vld [vmem:[#allocation32_spill] sm:$0xff]  ;;  %v2788_v21 = vmul.f32 %v2596_v59, %v3762_v50 }
 0x135   :  { %3740 = vst [vmem:[#allocation83_spill] sm:$0xff] %v2732_v61  ;;  %3742 = vst [vmem:[#allocation84_spill] sm:$0xff] %v2736_v25  ;;  %v2752_v45 = vmul.f32 %v2578_v43, %v3747_v16  ;;  %v3748_v61 = vld [vmem:[#allocation29_spill] sm:$0xff]  ;;  %v3749_v25 = vld [vmem:[#allocation30_spill] sm:$0xff]  ;;  %v2772_v16 = vmul.f32 %v2588_v63, %v3754_v42 }
 0x136   :  { %3744 = vst [vmem:[#allocation85_spill] sm:$0xff] %v2740_v2  ;;  %v2756_v6 = vmul.f32 %v2580_v47, %v3748_v61  ;;  %v2760_v13 = vmul.f32 %v2582_v17, %v3749_v25  ;;  %v3750_v2 = vld [vmem:[#allocation36_spill] sm:$0xff]  ;;  %3753 = vst [vmem:[#allocation16_spill] sm:$0xff] %v2768_v4  ;;  %v2776_v61 = vmul.f32 %v2590_v39, %v3756_v7  ;;  %v3758_v41 = vld [vmem:[#allocation38_spill] sm:$0xff] }
 0x137   :  { %v2764_v35 = vmul.f32 %v2584_v32, %v3750_v2  ;;  %3755 = vst [vmem:[#allocation13_spill] sm:$0xff] %v2772_v16  ;;  %v2780_v25 = vmul.f32 %v2592_v23, %v3758_v41  ;;  %v2784_v2 = vmul.f32 %v2594_v8, %v3760_v44  ;;  %3763 = vst [vmem:[#allocation19_spill] sm:$0xff] %v2788_v21  ;;  %v3764_v4 = vld [vmem:[#allocation34_spill] sm:$0xff]  ;;  %v3765_v16 = vld [vmem:[#allocation40_spill] sm:$0xff] }
 0x138   :  { %3757 = vst [vmem:[#allocation17_spill] sm:$0xff] %v2776_v61  ;;  %v2792_v42 = vmul.f32 %v2574_v62, %v3764_v4  ;;  %v2796_v7 = vmul.f32 %v2576_v28, %v3765_v16  ;;  %v3766_v61 = vld [vmem:[#allocation35_spill] sm:$0xff]  ;;  %v3772_v21 = vld [vmem:[#allocation48_spill] sm:$0xff]  ;;  %v2816_v16 = vmul.f32 %v2586_v3, %v3774_v14  ;;  %v3776_v24 = vld [vmem:[#allocation49_spill] sm:$0xff] }
 0x139   :  { %3751 = vst [vmem:[#allocation12_spill] sm:$0xff] %v2764_v35  ;;  %3759 = vst [vmem:[#allocation18_spill] sm:$0xff] %v2780_v25  ;;  %v2800_v41 = vmul.f32 %v2578_v43, %v3766_v61  ;;  %v3768_v25 = vld [vmem:[#allocation41_spill] sm:$0xff]  ;;  %v2812_v4 = vmul.f32 %v2584_v32, %v3772_v21  ;;  %v2820_v61 = vmul.f32 %v2588_v63, %v3776_v24  ;;  %v3778_v35 = vld [vmem:[#allocation44_spill] sm:$0xff] }
 0x13a   :  { %3761 = vst [vmem:[#allocation24_spill] sm:$0xff] %v2784_v2  ;;  %v2804_v44 = vmul.f32 %v2580_v47, %v3768_v25  ;;  %v3770_v2 = vld [vmem:[#allocation42_spill] sm:$0xff]  ;;  %3775 = vst [vmem:[#allocation27_spill] sm:$0xff] %v2816_v16  ;;  %v2824_v25 = vmul.f32 %v2590_v39, %v3778_v35  ;;  %v3797_v5 = vld [vmem:[#allocation55_spill] sm:$0xff] }
 0x13b   :  { %3767 = vst [vmem:[#allocation25_spill] sm:$0xff] %v2800_v41  ;;  %v2808_v50 = vmul.f32 %v2582_v17, %v3770_v2  ;;  %3773 = vst [vmem:[#allocation21_spill] sm:$0xff] %v2812_v4  ;;  %v3784_v4 = vld [vmem:[#allocation51_spill] sm:$0xff]  ;;  %v3786_v16 = vld [vmem:[#allocation46_spill] sm:$0xff] }
 0x13c   :  { %3769 = vst [vmem:[#allocation20_spill] sm:$0xff] %v2804_v44  ;;  %3777 = vst [vmem:[#allocation22_spill] sm:$0xff] %v2820_v61  ;;  %v3780_v44 = vld [vmem:[#allocation50_spill] sm:$0xff]  ;;  %v2836_v14 = vmul.f32 %v2596_v59, %v3784_v4  ;;  %v2840_v24 = vmul.f32 %v2574_v62, %v3786_v16  ;;  %v3787_v61 = vld [vmem:[#allocation52_spill] sm:$0xff] }
 0x13d   :  { %3771 = vst [vmem:[#allocation26_spill] sm:$0xff] %v2808_v50  ;;  %3779 = vst [vmem:[#allocation28_spill] sm:$0xff] %v2824_v25  ;;  %v2828_v2 = vmul.f32 %v2592_v23, %v3780_v44  ;;  %v3782_v50 = vld [vmem:[#allocation45_spill] sm:$0xff]  ;;  %v2844_v35 = vmul.f32 %v2576_v28, %v3787_v61  ;;  %v3789_v25 = vld [vmem:[#allocation47_spill] sm:$0xff]  ;;  %v2864_v61 = vmul.f32 %v2586_v3, %v3797_v5 }
 0x13e   :  { %v2832_v21 = vmul.f32 %v2594_v8, %v3782_v50  ;;  %3785 = vst [vmem:[#allocation30_spill] sm:$0xff] %v2836_v14  ;;  %v2848_v44 = vmul.f32 %v2578_v43, %v3789_v25  ;;  %v3795_v14 = vld [vmem:[#allocation60_spill] sm:$0xff]  ;;  %v3817_v41 = vld [vmem:[#allocation67_spill] sm:$0xff] }
 0x13f   :  { %3781 = vst [vmem:[#allocation23_spill] sm:$0xff] %v2828_v2  ;;  %3788 = vst [vmem:[#allocation36_spill] sm:$0xff] %v2844_v35  ;;  %v3791_v2 = vld [vmem:[#allocation53_spill] sm:$0xff]  ;;  %v2860_v16 = vmul.f32 %v2584_v32, %v3795_v14 }
 0x140   :  { %3783 = vst [vmem:[#allocation29_spill] sm:$0xff] %v2832_v21  ;;  %3790 = vst [vmem:[#allocation31_spill] sm:$0xff] %v2848_v44  ;;  %v2852_v50 = vmul.f32 %v2580_v47, %v3791_v2  ;;  %v3793_v21 = vld [vmem:[#allocation54_spill] sm:$0xff]  ;;  %v3799_v35 = vld [vmem:[#allocation61_spill] sm:$0xff] }
 0x141   :  { %v2856_v4 = vmul.f32 %v2582_v17, %v3793_v21  ;;  %3796 = vst [vmem:[#allocation38_spill] sm:$0xff] %v2860_v16  ;;  %3798 = vst [vmem:[#allocation33_spill] sm:$0xff] %v2864_v61  ;;  %v2868_v25 = vmul.f32 %v2588_v63, %v3799_v35  ;;  %v3801_v44 = vld [vmem:[#allocation56_spill] sm:$0xff]  ;;  %v3807_v16 = vld [vmem:[#allocation63_spill] sm:$0xff] }
 0x142   :  { %3792 = vst [vmem:[#allocation37_spill] sm:$0xff] %v2852_v50  ;;  %v2872_v2 = vmul.f32 %v2590_v39, %v3801_v44  ;;  %v3803_v50 = vld [vmem:[#allocation62_spill] sm:$0xff]  ;;  %v2884_v5 = vmul.f32 %v2596_v59, %v3807_v16 }
 0x143   :  { %3794 = vst [vmem:[#allocation32_spill] sm:$0xff] %v2856_v4  ;;  %3800 = vst [vmem:[#allocation39_spill] sm:$0xff] %v2868_v25  ;;  %v2876_v21 = vmul.f32 %v2592_v23, %v3803_v50  ;;  %v3805_v4 = vld [vmem:[#allocation57_spill] sm:$0xff]  ;;  %v3809_v61 = vld [vmem:[#allocation58_spill] sm:$0xff] }
 0x144   :  { %3802 = vst [vmem:[#allocation34_spill] sm:$0xff] %v2872_v2  ;;  %v2880_v14 = vmul.f32 %v2594_v8, %v3805_v4  ;;  %3808 = vst [vmem:[#allocation41_spill] sm:$0xff] %v2884_v5  ;;  %v2888_v35 = vmul.f32 %v2574_v62, %v3809_v61  ;;  %v3810_v25 = vld [vmem:[#allocation64_spill] sm:$0xff]  ;;  %v3812_v2 = vld [vmem:[#allocation59_spill] sm:$0xff] }
 0x145   :  { %3804 = vst [vmem:[#allocation40_spill] sm:$0xff] %v2876_v21  ;;  %v2892_v44 = vmul.f32 %v2576_v28, %v3810_v25  ;;  %v2896_v50 = vmul.f32 %v2578_v43, %v3812_v2  ;;  %v3813_v21 = vld [vmem:[#allocation65_spill] sm:$0xff]  ;;  %v3816_v5 = vld [vmem:[#allocation72_spill] sm:$0xff]  ;;  %v2912_v25 = vmul.f32 %v2586_v3, %v3817_v41  ;;  %v2933_v41 = vmul.f32 %v2596_v59, %v2548_v51 }
 0x146   :  { %3806 = vst [vmem:[#allocation35_spill] sm:$0xff] %v2880_v14  ;;  %v2900_v4 = vmul.f32 %v2580_v47, %v3813_v21  ;;  %v3814_v14 = vld [vmem:[#allocation66_spill] sm:$0xff]  ;;  %v2908_v61 = vmul.f32 %v2584_v32, %v3816_v5  ;;  %v2920_v21 = vmul.f32 %v2590_v39, %v2542_v31  ;;  %v2929_v5 = vmul.f32 %v2594_v8, %v2546_v19 }
 0x147   :  { %3811 = vst [vmem:[#allocation42_spill] sm:$0xff] %v2892_v44  ;;  %v2904_v16 = vmul.f32 %v2582_v17, %v3814_v14  ;;  %v3818_v44 = vld [vmem:[#allocation73_spill] sm:$0xff]  ;;  %v1257_v14 = vrot.slane %v2648_v56, 7  ;;  %v2938_v31 = vmul.f32 %v2574_v62, %v2550_v57  ;;  %v2942_v56 = vmul.f32 %v2576_v28, %v2552_v29 }
 0x148   :  { %v2916_v2 = vmul.f32 %v2588_v63, %v3818_v44  ;;  %v1278_v44 = vrot.slane %v2652_v27, 7  ;;  %v2950_v19 = vmul.f32 %v2580_v47, %v2556_v12  ;;  %v2954_v51 = vmul.f32 %v2582_v17, %v2558_v1 }
 0x149   :  { %3815 = vst [vmem:[#allocation48_spill] sm:$0xff] %v2904_v16  ;;  %v2925_v16 = vmul.f32 %v2592_v23, %v2544_v38  ;;  %v2946_v38 = vmul.f32 %v2578_v43, %v2554_v49  ;;  %v2958_v57 = vmul.f32 %v2584_v32, %v2560_v46  ;;  %v1260_v29 = vrot.slane %v2696_v18, 6 }
 0x14a   :  { %v1292_v62 = vrot.slane %v2656_v20, 7  ;;  %v2964_v49 = vmul.f32 %v2586_v3, %v2562_v26  ;;  %v1259_v12 = vsel %vm1258_vm0, %v1257_v14, %v2600_v34  ;;  %v1280_v28 = vrot.slane %v2700_v33, 6 }
 0x14b   :  { %v1306_v1 = vrot.slane %v2660_v36, 7  ;;  %v2972_v43 = vmul.f32 %v2588_v63, %v2564_v58  ;;  %v2976_v46 = vmul.f32 %v2590_v39, %v2566_v0  ;;  %v2980_v47 = vmul.f32 %v2592_v23, %v2568_v9 }
 0x14c   :  { %v1279_v26 = vsel %vm1258_vm0, %v1278_v44, %v2604_v60  ;;  %v2986_v17 = vmul.f32 %v2594_v8, %v2570_v30  ;;  %v1263_v32 = vrot.slane %v2744_v15, 5  ;;  %v1282_v58 = vrot.slane %v2748_v53, 5  ;;  %v3822_v44 = vld [vmem:[#allocation20_spill] sm:$0xff] }
 0x14d   :  { %v1294_v3 = vrot.slane %v2704_v37, 6  ;;  %v1262_v0 = vsel %vm1261_vm1, %v1260_v29, %v1259_v12  ;;  %v1293_v9 = vsel %vm1258_vm0, %v1292_v62, %v2608_v52  ;;  %v1308_v63 = vrot.slane %v2708_v11, 6  ;;  %v3823_v29 = vld [vmem:[#allocation26_spill] sm:$0xff]  ;;  %v3824_v12 = vld [vmem:[#allocation12_spill] sm:$0xff] }
 0x14e   :  { %v1320_v39 = vrot.slane %v2664_v54, 7  ;;  %v1266_v23 = vrot.slane %v2792_v42, 4  ;;  %v1281_v30 = vsel %vm1261_vm1, %v1280_v28, %v1279_v26  ;;  %v1307_v8 = vsel %vm1258_vm0, %v1306_v1, %v2612_v40  ;;  %v3820_v42 = vld [vmem:[#allocation74_spill] sm:$0xff]  ;;  %v3825_v26 = vld [vmem:[#allocation31_spill] sm:$0xff] }
 0x14f   :  { %v1322_v34 = vrot.slane %v2712_v55, 6  ;;  %v1269_v60 = vrot.slane %v2840_v24, 3  ;;  %v1284_v27 = vrot.slane %v2796_v7, 4  ;;  %v1296_v52 = vrot.slane %v2752_v45, 5  ;;  %v3821_v7 = vld [vmem:[#allocation36_spill] sm:$0xff] }
 0x150   :  { %v1321_v20 = vsel %vm1258_vm0, %v1320_v39, %v2616_v48  ;;  %v1265_v36 = vsel %vm1264_vm2, %v1263_v32, %v1262_v0  ;;  %v1295_v54 = vsel %vm1261_vm1, %v1294_v3, %v1293_v9  ;;  %v1310_v18 = vrot.slane %v2756_v6, 5  ;;  %v3819_v48 = vld [vmem:[#allocation25_spill] sm:$0xff]  ;;  %v3826_v9 = vld [vmem:[#allocation42_spill] sm:$0xff] }
 0x151   :  { %v1334_v33 = vrot.slane %v2668_v22, 7  ;;  %v1283_v40 = vsel %vm1264_vm2, %v1282_v58, %v1281_v30  ;;  %v1309_v37 = vsel %vm1261_vm1, %v1308_v63, %v1307_v8  ;;  %v1324_v11 = vrot.slane %v2760_v13, 5 }
 0x152   :  { %v1336_v55 = vrot.slane %v2716_v10, 6  ;;  %v1272_v15 = vrot.slane %v2888_v35, 2  ;;  %v1298_v53 = vrot.slane %v3819_v48, 4  ;;  %v1323_v45 = vsel %vm1261_vm1, %v1322_v34, %v1321_v20 }
 0x153   :  { %v1335_v6 = vsel %vm1258_vm0, %v1334_v33, %v3820_v42  ;;  %v1268_v22 = vsel %vm1267_vm3, %v1266_v23, %v1265_v36  ;;  %v1286_v24 = vrot.slane %v3821_v7, 3  ;;  %v1297_v14 = vsel %vm1264_vm2, %v1296_v52, %v1295_v54  ;;  %v3827_v23 = vld [vmem:[#allocation37_spill] sm:$0xff]  ;;  %v3832_v42 = vld [vmem:[#allocation38_spill] sm:$0xff] }
 0x154   :  { %v1312_v13 = vrot.slane %v3822_v44, 4  ;;  %v1285_v10 = vsel %vm1267_vm3, %v1284_v27, %v1283_v40  ;;  %v1311_v35 = vsel %vm1264_vm2, %v1310_v18, %v1309_v37  ;;  %v1326_v62 = vrot.slane %v3823_v29, 4  ;;  %v3828_v27 = vld [vmem:[#allocation32_spill] sm:$0xff]  ;;  %v3829_v52 = vld [vmem:[#allocation21_spill] sm:$0xff]  ;;  %v3830_v18 = vld [vmem:[#allocation78_spill] sm:$0xff] }
 0x155   :  { %v1338_v28 = vrot.slane %v3824_v12, 5  ;;  %v1275_v1 = vrot.slane %v2938_v31, 1  ;;  %v1300_v32 = vrot.slane %v3825_v26, 3  ;;  %v1325_v58 = vsel %vm1264_vm2, %v1324_v11, %v1323_v45  ;;  %v3831_v45 = vld [vmem:[#allocation48_spill] sm:$0xff]  ;;  %v3834_v44 = vld [vmem:[#allocation69_spill] sm:$0xff] }
 0x156   :  { %v1337_v3 = vsel %vm1261_vm1, %v1336_v55, %v1335_v6  ;;  %v1271_v0 = vsel %vm1270_vm4, %v1269_v60, %v1268_v22  ;;  %v1288_v63 = vrot.slane %v3826_v9, 2  ;;  %v1299_v39 = vsel %vm1267_vm3, %v1298_v53, %v1297_v14 }
 0x157   :  { %v1314_v30 = vrot.slane %v3827_v23, 3  ;;  %v1287_v8 = vsel %vm1270_vm4, %v1286_v24, %v1285_v10  ;;  %v1313_v34 = vsel %vm1267_vm3, %v1312_v13, %v1311_v35  ;;  %v1328_v31 = vrot.slane %v3828_v27, 3  ;;  %v3833_v24 = vld [vmem:[#allocation11_spill] sm:$0xff] }
 0x158   :  { %v1340_v20 = vrot.slane %v3829_v52, 4  ;;  %v1302_v36 = vrot.slane %v2896_v50, 2  ;;  %v1327_v54 = vsel %vm1267_vm3, %v1326_v62, %v1325_v58  ;;  %v1339_v60 = vsel %vm1264_vm2, %v1338_v28, %v1337_v3  ;;  %v3835_v10 = vld [vmem:[#allocation79_spill] sm:$0xff] }
 0x159   :  { %v1348_v33 = vrot.slane %v3830_v18, 7  ;;  %v1274_v40 = vsel %vm1273_vm5, %v1272_v15, %v1271_v0  ;;  %v1290_v37 = vrot.slane %v2942_v56, 1  ;;  %v1301_v11 = vsel %vm1270_vm4, %v1300_v32, %v1299_v39  ;;  %v3836_v32 = vld [vmem:[#allocation16_spill] sm:$0xff]  ;;  %v3839_v23 = vld [vmem:[#allocation75_spill] sm:$0xff]  ;;  %v3843_v18 = vld [vmem:[#allocation13_spill] sm:$0xff] }
 0x15a   :  { %v1316_v55 = vrot.slane %v2900_v4, 2  ;;  %v1289_v48 = vsel %vm1273_vm5, %v1288_v63, %v1287_v8  ;;  %v1315_v53 = vsel %vm1270_vm4, %v1314_v30, %v1313_v34  ;;  %v1330_v50 = vrot.slane %v3831_v45, 2  ;;  %v3838_v63 = vld [vmem:[#allocation15_spill] sm:$0xff]  ;;  %v3840_v8 = vld [vmem:[#allocation81_spill] sm:$0xff] }
 0x15b   :  { %v1342_v6 = vrot.slane %v3832_v42, 3  ;;  %v1304_v22 = vrot.slane %v2946_v38, 1  ;;  %v1329_v7 = vsel %vm1270_vm4, %v1328_v31, %v1327_v54  ;;  %v1341_v15 = vsel %vm1267_vm3, %v1340_v20, %v1339_v60  ;;  %v3841_v52 = vld [vmem:[#allocation27_spill] sm:$0xff] }
 0x15c   :  { %v1350_v56 = vrot.slane %v3833_v24, 6  ;;  %v1303_v14 = vsel %vm1273_vm5, %v1302_v36, %v1301_v11  ;;  %v1318_v4 = vrot.slane %v2950_v19, 1  ;;  %v1349_v13 = vsel %vm1258_vm0, %v1348_v33, %v3834_v44  ;;  %v3837_v19 = vld [vmem:[#allocation80_spill] sm:$0xff]  ;;  %v3842_v36 = vld [vmem:[#allocation82_spill] sm:$0xff] }
 0x15d   :  { %v1362_v35 = vrot.slane %v3835_v10, 7  ;;  %v1277_v29 = vsel %vm1276_vm6, %v1275_v1, %v1274_v40  ;;  %v1317_v62 = vsel %vm1273_vm5, %v1316_v55, %v1315_v53  ;;  %v1332_v38 = vrot.slane %v2954_v51, 1  ;;  %v3844_v40 = vld [vmem:[#allocation70_spill] sm:$0xff]  ;;  %v3846_v55 = vld [vmem:[#allocation33_spill] sm:$0xff]  ;;  %v3849_v24 = vld [vmem:[#allocation76_spill] sm:$0xff] }
 0x15e   :  { %v1344_v12 = vrot.slane %v2908_v61, 2  ;;  %v1331_v28 = vsel %vm1273_vm5, %v1330_v50, %v1329_v7  ;;  %v1343_v26 = vsel %vm1270_vm4, %v1342_v6, %v1341_v15  ;;  %v1352_v58 = vrot.slane %v3836_v32, 5  ;;  %v3847_v50 = vld [vmem:[#allocation83_spill] sm:$0xff]  ;;  %v3848_v7 = vld [vmem:[#allocation17_spill] sm:$0xff] }
 0x15f   :  { %v1376_v3 = vrot.slane %v3837_v19, 7  ;;  %v1291_v0 = vsel %vm1276_vm6, %v1290_v37, %v1289_v48  ;;  %v1305_v9 = vsel %vm1276_vm6, %v1304_v22, %v1303_v14  ;;  %v1351_v1 = vsel %vm1261_vm1, %v1350_v56, %v1349_v13  ;;  %v3845_v37 = vld [vmem:[#allocation10_spill] sm:$0xff]  ;;  %v3855_v32 = vld [vmem:[#allocation39_spill] sm:$0xff]  ;;  %v3856_v19 = vld [vmem:[#allocation28_spill] sm:$0xff] }
 0x160   :  { %v1364_v39 = vrot.slane %v3838_v63, 6  ;;  %v1319_v51 = vsel %vm1276_vm6, %v1318_v4, %v1317_v62  ;;  %v1346_v61 = vrot.slane %v2958_v57, 1  ;;  %v1363_v30 = vsel %vm1258_vm0, %v1362_v35, %v3839_v23  ;;  %v3850_v4 = vld [vmem:[#allocation22_spill] sm:$0xff]  ;;  %v3857_v63 = vld [vmem:[#allocation85_spill] sm:$0xff] }
 0x161   :  { %v1390_v34 = vrot.slane %v3840_v8, 7  ;;  %v1333_v27 = vsel %vm1276_vm6, %v1332_v38, %v1331_v28  ;;  %v1345_v31 = vsel %vm1273_vm5, %v1344_v12, %v1343_v26  ;;  %v1354_v20 = vrot.slane %v3841_v52, 4  ;;  %v3852_v62 = vld [vmem:[#allocation18_spill] sm:$0xff]  ;;  %v3853_v12 = vld [vmem:[#allocation71_spill] sm:$0xff] }
 0x162   :  { %v1378_v54 = vrot.slane %v3842_v36, 6  ;;  %v1353_v60 = vsel %vm1264_vm2, %v1352_v58, %v1351_v1  ;;  %v1366_v33 = vrot.slane %v3843_v18, 5  ;;  %v1377_v57 = vsel %vm1258_vm0, %v1376_v3, %v3844_v40  ;;  %v3854_v28 = vld [vmem:[#allocation14_spill] sm:$0xff] }
 0x163   :  { %v1404_v11 = vrot.slane %v3845_v37, 7  ;;  %v1356_v48 = vrot.slane %v3846_v55, 3  ;;  %v1358_v53 = vrot.slane %v2912_v25, 2  ;;  %v1365_v45 = vsel %vm1261_vm1, %v1364_v39, %v1363_v30  ;;  %v3851_v25 = vld [vmem:[#allocation84_spill] sm:$0xff]  ;;  %v3862_v37 = vld [vmem:[#allocation19_spill] sm:$0xff] }
 0x164   :  { %v1392_v42 = vrot.slane %v3847_v50, 6  ;;  %v1347_v6 = vsel %vm1276_vm6, %v1346_v61, %v1345_v31  ;;  %v1360_v22 = vrot.slane %v2964_v49, 1  ;;  %v1380_v15 = vrot.slane %v3848_v7, 5  ;;  %v3858_v30 = vld [vmem:[#allocation24_spill] sm:$0xff] }
 0x165   :  { %v1391_v56 = vsel %vm1258_vm0, %v1390_v34, %v3849_v24  ;;  %v1355_v14 = vsel %vm1267_vm3, %v1354_v20, %v1353_v60  ;;  %v1368_v44 = vrot.slane %v3850_v4, 4  ;;  %v1379_v13 = vsel %vm1261_vm1, %v1378_v54, %v1377_v57  ;;  %v3859_v34 = vld [vmem:[#allocation77_spill] sm:$0xff]  ;;  %v3860_v20 = vld [vmem:[#allocation23_spill] sm:$0xff] }
 0x166   :  { %v1406_v10 = vrot.slane %v3851_v25, 6  ;;  %v1367_v35 = vsel %vm1264_vm2, %v1366_v33, %v1365_v45  ;;  %v1394_v38 = vrot.slane %v3852_v62, 5  ;;  %v1405_v49 = vsel %vm1258_vm0, %v1404_v11, %v3853_v12  ;;  %v3861_v33 = vld [vmem:[#allocation34_spill] sm:$0xff] }
 0x167   :  { %v1418_v26 = vrot.slane %v3854_v28, 7  ;;  %v1370_v58 = vrot.slane %v3855_v32, 3  ;;  %v1382_v3 = vrot.slane %v3856_v19, 4  ;;  %v1393_v1 = vsel %vm1261_vm1, %v1392_v42, %v1391_v56 }
 0x168   :  { %v1420_v39 = vrot.slane %v3857_v63, 6  ;;  %v1357_v61 = vsel %vm1270_vm4, %v1356_v48, %v1355_v14  ;;  %v1381_v23 = vsel %vm1264_vm2, %v1380_v15, %v1379_v13  ;;  %v1408_v8 = vrot.slane %v3858_v30, 5  ;;  %v3863_v48 = vld [vmem:[#allocation29_spill] sm:$0xff]  ;;  %v3865_v14 = vld [vmem:[#allocation30_spill] sm:$0xff] }
 0x169   :  { %v1419_v31 = vsel %vm1258_vm0, %v1418_v26, %v3859_v34  ;;  %v1369_v52 = vsel %vm1267_vm3, %v1368_v44, %v1367_v35  ;;  %v1396_v36 = vrot.slane %v3860_v20, 4  ;;  %v1407_v54 = vsel %vm1261_vm1, %v1406_v10, %v1405_v49 }
 0x16a   :  { %v1444_v60 = vadd.f32 %v1291_v0, %v1277_v29  ;;  %v1372_v18 = vrot.slane %v2916_v2, 2  ;;  %v1384_v40 = vrot.slane %v3861_v33, 3  ;;  %v1395_v57 = vsel %vm1264_vm2, %v1394_v38, %v1393_v1  ;;  %v3864_v29 = vld [vmem:[#allocation40_spill] sm:$0xff] }
 0x16b   :  { %v1422_v11 = vrot.slane %v3862_v37, 5  ;;  %v1383_v55 = vsel %vm1267_vm3, %v1382_v3, %v1381_v23  ;;  %v1410_v45 = vrot.slane %v3863_v48, 4  ;;  %v1421_v50 = vsel %vm1261_vm1, %v1420_v39, %v1419_v31  ;;  %v3868_v3 = vld [vmem:[#allocation68_spill] sm:$0xff] }
 0x16c   :  { %v1445_v42 = vadd.f32 %v1444_v60, %v1305_v9  ;;  %v1359_v7 = vsel %vm1273_vm5, %v1358_v53, %v1357_v61  ;;  %v1371_v15 = vsel %vm1270_vm4, %v1370_v58, %v1369_v52  ;;  %v1398_v0 = vrot.slane %v3864_v29, 3  ;;  %v3866_v9 = vld [vmem:[#allocation35_spill] sm:$0xff] }
 0x16d   :  { %v1409_v2 = vsel %vm1264_vm2, %v1408_v8, %v1407_v54  ;;  %v1386_v24 = vrot.slane %v2920_v21, 2  ;;  %v1397_v56 = vsel %vm1267_vm3, %v1396_v36, %v1395_v57  ;;  %v1424_v4 = vrot.slane %v3865_v14, 4 }
 0x16e   :  { %v1446_v44 = vadd.f32 %v1445_v42, %v1319_v51  ;;  %v1374_v13 = vrot.slane %v2972_v43, 1  ;;  %v1385_v25 = vsel %vm1270_vm4, %v1384_v40, %v1383_v55  ;;  %v1412_v10 = vrot.slane %v3866_v9, 3  ;;  %v3867_v43 = vld [vmem:[#allocation41_spill] sm:$0xff] }
 0x16f   :  { %v1423_v53 = vsel %vm1264_vm2, %v1422_v11, %v1421_v50  ;;  %v1373_v35 = vsel %vm1273_vm5, %v1372_v18, %v1371_v15  ;;  %v1400_v62 = vrot.slane %v2925_v16, 2  ;;  %v1411_v38 = vsel %vm1267_vm3, %v1410_v45, %v1409_v2 }
 0x170   :  { %v1447_v21 = vadd.f32 %v1446_v44, %v1333_v27  ;;  %v1361_v12 = vsel %vm1276_vm6, %v1360_v22, %v1359_v7  ;;  %v1388_v49 = vrot.slane %v2976_v46, 1  ;;  %v1399_v51 = vsel %vm1270_vm4, %v1398_v0, %v1397_v56 }
 0x171   :  { %v1426_v28 = vrot.slane %v3867_v43, 3  ;;  %v1387_v26 = vsel %vm1273_vm5, %v1386_v24, %v1385_v25  ;;  %v1414_v32 = vrot.slane %v2929_v5, 2  ;;  %v1425_v58 = vsel %vm1267_vm3, %v1424_v4, %v1423_v53 }
 0x172   :  { %v1448_v19 = vadd.f32 %v1447_v21, %v1347_v6  ;;  %v1160_v16 = vmul.f32 %v2596_v59, %v3868_v3  ;;  %v1375_v27 = vsel %vm1276_vm6, %v1374_v13, %v1373_v35  ;;  %v1402_v22 = vrot.slane %v2980_v47, 1 }
 0x173   :  { %v1413_v46 = vsel %vm1270_vm4, %v1412_v10, %v1411_v38  ;;  %v1401_v1 = vsel %vm1273_vm5, %v1400_v62, %v1399_v51  ;;  %v1428_v63 = vrot.slane %v2933_v41, 2  ;;  %v1389_v61 = vsel %vm1276_vm6, %v1388_v49, %v1387_v26 }
 0x174   :  { %v1449_v39 = vadd.f32 %v1448_v19, %v1361_v12  ;;  %v1416_v5 = vrot.slane %v2986_v17, 1  ;;  %v1427_v6 = vsel %vm1270_vm4, %v1426_v28, %v1425_v58  ;;  %v1415_v23 = vsel %vm1273_vm5, %v1414_v32, %v1413_v46 }
 0x175   :  { %v1403_v30 = vsel %vm1276_vm6, %v1402_v22, %v1401_v1  ;;  %v1430_v8 = vrot.slane %v1160_v16, 1  ;;  %v1429_v47 = vsel %vm1273_vm5, %v1428_v63, %v1427_v6  ;;  %v1458_v17 = vstv %s3167_s2 }
 0x176   :  { %v1450_v59 = vadd.f32 %v1449_v39, %v1375_v27  ;;  %v1417_v31 = vsel %vm1276_vm6, %v1416_v5, %v1415_v23 }
 0x177   :  { %v1431_v41 = vsel %vm1276_vm6, %v1430_v8, %v1429_v47 }
 0x178   :  { %v1451_v34 = vadd.f32 %v1450_v59, %v1389_v61 }
 0x17a   :  { %v1452_v52 = vadd.f32 %v1451_v34, %v1403_v30 }
 0x17c   :  { %v1453_v20 = vadd.f32 %v1452_v52, %v1417_v31 }
 0x17e   :  { %v1454_v36 = vadd.f32 %v1453_v20, %v1431_v41 }
 0x180   :  { %1455 = vadd.xlane.f32.xlu0 %v1454_v36 }
 0x20d   :  { %v1456_v54 = vpop.xlane.xlu0 %1455 }
 0x20e   :  { %v1459_v60 = vadd.f32 %v1458_v17, %v1456_v54 }
 0x210   :  { %v1509_v18 = vmul.f32 -1.442695, %v1459_v60 }
 0x212   :  { %1514 = vpow2.f32 %v1509_v18 }
 0x21c   :  { %v1515_v33 = vpop.eup %1514 }
 0x21d   :  { %v1463_v40 = vadd.f32 1.0, %v1515_v33 }
 0x21f   :  { %1516 = vrcp.f32 %v1463_v40 }
 0x229   :  { %v1517_v57 = vpop.eup %1516 }
 0x22a   :  { %1467 = vst.msk [vmem:[#allocation7] sm:$0xff] %vm1466_vm7, %v1517_v57 }
 0x231   :  { %v1485_v37 = vld [vmem:[#allocation7] sm:$0x3] }
 0x232   :  { %1486 = vst [vmem:[%s3168_s3] sm:$0x3] %v1485_v37 }
 0x233   :  { %1503 = vsyncpa [#allocation4], 1 }
 0x234   :  { %1504 = vsyncpa [#allocation6], 1 }

</bundles_post_ra>
